<compile_context>
chip_gen: v7x
topology: tpu7x:2x2x1
jax: 0.10.0
libtpu: 0.0.40
codegen_flags: <defaults>
</compile_context>

<pallas_src>
import math

import jax
import jax.numpy as jnp
from jax.experimental import pallas as pl
from jax.experimental.pallas import tpu as pltpu

D_MODEL = 32
NUM_HEADS = 4
D_FF = 64
DEPTH = D_MODEL // NUM_HEADS
LN_EPS = 1e-5

# Column layout of the fused input-projection slab (all take D_MODEL-dim inputs).
_SA_QKV = slice(0, 3 * D_MODEL)                       # self-attn fused QKV   (96)
_CA_Q = slice(3 * D_MODEL, 4 * D_MODEL)               # cross-attn Q          (32)
_CA_KV = slice(4 * D_MODEL, 6 * D_MODEL)              # cross-attn fused KV   (64)
_FF1 = slice(6 * D_MODEL, 6 * D_MODEL + D_FF)         # FFN linear1           (64)
W_IN_COLS = 6 * D_MODEL + D_FF                        # 256


def decoder_layer_kernel(xe_ref, bias_ref, w_in_ref, b_in_ref, w_out_ref,
                         misc_ref, o_ref):
    f32 = jnp.float32
    x = xe_ref[0]                      # (BS, D)   decoder input, batch-flattened
    enc = xe_ref[1]                    # (BS, D)   encoder output, batch-flattened
    sa_bias = bias_ref[0]              # (BS, BS)  additive bias (mask + batch blocks)
    ca_bias = bias_ref[1]              # (BS, BS)

    sa_bo = misc_ref[0:1, :]           # (1, D)
    ca_bo = misc_ref[1:2, :]
    ff_b2 = misc_ref[2:3, :]

    def layer_norm(v, idx):
        g = misc_ref[3 + idx:4 + idx, :]
        b = misc_ref[6 + idx:7 + idx, :]
        mu = jnp.mean(v, axis=-1, keepdims=True)
        var = jnp.mean((v - mu) ** 2, axis=-1, keepdims=True)
        return (v - mu) * jax.lax.rsqrt(var + LN_EPS) * g + b

    def attention(q2, kv2, bias, wo, bo):
        """q2: (BS, D) queries (scale pre-folded); kv2: (BS, 2D) fused K|V;
        bias: (BS, BS) additive mask; wo: (D, D) output proj (in,out); bo: (1, D)."""
        acc = None
        for h in range(NUM_HEADS):
            lo, hi = h * DEPTH, (h + 1) * DEPTH
            qh = q2[:, lo:hi]                              # (BS, E)
            kh = kv2[:, lo:hi]                             # (BS, E)
            vh = kv2[:, D_MODEL + lo:D_MODEL + hi]         # (BS, E)
            # K^T folded into the contraction (no explicit transpose).
            s = jnp.einsum('qe,ke->qk', qh, kh,
                           preferred_element_type=f32) + bias        # (BS, BS)
            m = jnp.max(s, axis=-1, keepdims=True)
            p = jnp.exp(s - m)
            probs = p / jnp.sum(p, axis=-1, keepdims=True)            # exact softmax
            ctx = jnp.dot(probs, vh, preferred_element_type=f32)      # (BS, E)
            # Head-combine fused into the output projection (accumulate per head).
            contrib = jnp.dot(ctx, wo[lo:hi, :], preferred_element_type=f32)
            acc = contrib if acc is None else acc + contrib
        return acc + bo

    # ---- masked self-attention (single fused QKV matmul) + residual + norm1 ----
    qkv = jnp.dot(x, w_in_ref[:, _SA_QKV],
                  preferred_element_type=f32) + b_in_ref[:, _SA_QKV]  # (BS, 3D)
    sa = attention(qkv[:, 0:D_MODEL], qkv[:, D_MODEL:3 * D_MODEL],
                   sa_bias, w_out_ref[0:D_MODEL, :], sa_bo)
    x1 = layer_norm(x + sa, 0)                              # dropout = identity

    # ---- cross-attention (fused K|V matmul on enc) + residual + norm2 ----
    q = jnp.dot(x1, w_in_ref[:, _CA_Q],
                preferred_element_type=f32) + b_in_ref[:, _CA_Q]      # (BS, D)
    kv = jnp.dot(enc, w_in_ref[:, _CA_KV],
                 preferred_element_type=f32) + b_in_ref[:, _CA_KV]    # (BS, 2D)
    ca = attention(q, kv, ca_bias, w_out_ref[D_MODEL:2 * D_MODEL, :], ca_bo)
    x2 = layer_norm(x1 + ca, 1)

    # ---- position-wise feed forward + residual + norm3 ----
    hid = jnp.maximum(jnp.dot(x2, w_in_ref[:, _FF1],
                              preferred_element_type=f32) + b_in_ref[:, _FF1], 0.0)
    ff = jnp.dot(hid, w_out_ref[2 * D_MODEL:2 * D_MODEL + D_FF, :],
                 preferred_element_type=f32) + ff_b2
    x3 = layer_norm(x2 + ff, 2)

    o_ref[...] = x3.astype(o_ref.dtype)


def _block_diag_bias(mask, B, S):
    """(B,S,S) {0,1}-mask -> (B*S, B*S) additive bias.

    In-batch masked entries get -1e9 (matches masked_fill(-1e9)); cross-batch
    entries get -2e9 so they never attract probability even if a row is fully
    masked in its own batch block."""
    in_block = jnp.where(mask == 0, -1e9, 0.0).astype(jnp.float32)        # (B,S,S)
    same_batch = (jnp.eye(B, dtype=jnp.float32) > 0)[:, None, :, None]     # (B,1,B,1)
    full = jnp.where(same_batch, in_block[:, :, None, :],
                     jnp.float32(-2e9))                                    # (B,S,B,S)
    return full.reshape(B * S, B * S)


def decoder_layer(x, enc_output, src_mask, tgt_mask, params):
    B, S, D = x.shape
    assert D == D_MODEL
    BS = B * S
    scale = 1.0 / math.sqrt(DEPTH)

    # ---------------- host-side packing (pure XLA, one-time) ----------------
    sa_w, sa_b = params["sa_w"], params["sa_b"]     # (4, D, D) PyTorch (out,in), (4, D)
    ca_w, ca_b = params["ca_w"], params["ca_b"]

    # Fused, pre-transposed (in, out) input projections; 1/sqrt(depth) folded into Q.
    w_in = jnp.concatenate(
        [sa_w[0].T * scale, sa_w[1].T, sa_w[2].T,       # self QKV
         ca_w[0].T * scale,                             # cross Q
         ca_w[1].T, ca_w[2].T,                          # cross KV
         params["w1"].T],                               # FFN linear1
        axis=1)                                         # (D, 256)
    b_in = jnp.concatenate(
        [sa_b[0] * scale, sa_b[1], sa_b[2],
         ca_b[0] * scale,
         ca_b[1], ca_b[2],
         params["b1"].reshape(-1)]).reshape(1, W_IN_COLS)

    # Output-side projections, pre-transposed to (in, out).
    w_out = jnp.concatenate([sa_w[3].T, ca_w[3].T, params["w2"].T], axis=0)  # (128, D)

    # Small per-feature vectors: output biases + LayerNorm gamma/beta.
    misc = jnp.concatenate(
        [sa_b[3][None, :], ca_b[3][None, :], params["b2"].reshape(1, D),
         params["gamma"], params["beta"]], axis=0)       # (9, D)

    # Activations flattened to (B*S, D) and stacked into one input.
    xe = jnp.stack([x.reshape(BS, D), enc_output.reshape(BS, D)], axis=0)

    # Masks -> batch-block-diagonal additive biases, stacked into one input.
    bias = jnp.stack([_block_diag_bias(tgt_mask, B, S),
                      _block_diag_bias(src_mask, B, S)], axis=0)  # (2, BS, BS)

    in_specs = [
        pl.BlockSpec((2, BS, D), lambda i: (0, 0, 0)),           # x | enc
        pl.BlockSpec((2, BS, BS), lambda i: (0, 0, 0)),          # tgt | src bias
        pl.BlockSpec((D, W_IN_COLS), lambda i: (0, 0)),          # fused input weights
        pl.BlockSpec((1, W_IN_COLS), lambda i: (0, 0)),          # fused input biases
        pl.BlockSpec((2 * D + D_FF, D), lambda i: (0, 0)),       # fused output weights
        pl.BlockSpec((9, D), lambda i: (0, 0)),                  # out biases + LN params
    ]
    out_spec = pl.BlockSpec((BS, D), lambda i: (0, 0))

    out = pl.pallas_call(
        decoder_layer_kernel,
        out_shape=jax.ShapeDtypeStruct((BS, D), jnp.float32),
        grid=(1,),                      # single step: whole batch, one TensorCore
        in_specs=in_specs,
        out_specs=out_spec,
        compiler_params=pltpu.CompilerParams(
            dimension_semantics=("arbitrary",)),
    )(xe, bias, w_in, b_in, w_out, misc)

    return out.reshape(B, S, D)


def decoder_layer_reference(x, enc, src_mask, tgt_mask, p):
    """Pure-JAX reference with PyTorch semantics (for the correctness check)."""
    def ln(v, g, b):
        mu = v.mean(-1, keepdims=True)
        var = ((v - mu) ** 2).mean(-1, keepdims=True)
        return (v - mu) / jnp.sqrt(var + LN_EPS) * g + b

    def mha(q_in, kv_in, w, b, mask):
        Q = q_in @ w[0].T + b[0]
        K = kv_in @ w[1].T + b[1]
        V = kv_in @ w[2].T + b[2]
        B_, S_, D_ = Q.shape
        Qh = Q.reshape(B_, S_, NUM_HEADS, DEPTH).transpose(0, 2, 1, 3)
        Kh = K.reshape(B_, S_, NUM_HEADS, DEPTH).transpose(0, 2, 1, 3)
        Vh = V.reshape(B_, S_, NUM_HEADS, DEPTH).transpose(0, 2, 1, 3)
        scores = (Qh @ Kh.transpose(0, 1, 3, 2)) / math.sqrt(DEPTH)
        scores = jnp.where(mask[:, None] == 0, -1e9, scores)
        probs = jax.nn.softmax(scores, axis=-1)
        out = (probs @ Vh).transpose(0, 2, 1, 3).reshape(B_, S_, D_)
        return out @ w[3].T + b[3]

    sa = mha(x, x, p["sa_w"], p["sa_b"], tgt_mask)
    x1 = ln(x + sa, p["gamma"][0], p["beta"][0])
    ca = mha(x1, enc, p["ca_w"], p["ca_b"], src_mask)
    x2 = ln(x1 + ca, p["gamma"][1], p["beta"][1])
    h = jnp.maximum(x2 @ p["w1"].T + p["b1"], 0.0)
    ff = h @ p["w2"].T + p["b2"]
    return ln(x2 + ff, p["gamma"][2], p["beta"][2])


if __name__ == "__main__":
    key = jax.random.PRNGKey(0)
    ks = jax.random.split(key, 10)

    B, S = 2, 8
    x = jax.random.normal(ks[0], (B, S, D_MODEL), jnp.float32)
    enc_output = jax.random.normal(ks[1], (B, S, D_MODEL), jnp.float32)

    # causal target mask, all-ones source mask (0 == masked)
    tgt_mask = jnp.broadcast_to(jnp.tril(jnp.ones((S, S), jnp.float32)), (B, S, S))
    src_mask = jnp.ones((B, S, S), jnp.float32)

    sc = 0.1
    params = {
        "sa_w": sc * jax.random.normal(ks[2], (4, D_MODEL, D_MODEL), jnp.float32),
        "sa_b": sc * jax.random.normal(ks[3], (4, D_MODEL), jnp.float32),
        "ca_w": sc * jax.random.normal(ks[4], (4, D_MODEL, D_MODEL), jnp.float32),
        "ca_b": sc * jax.random.normal(ks[5], (4, D_MODEL), jnp.float32),
        "w1": sc * jax.random.normal(ks[6], (D_FF, D_MODEL), jnp.float32),
        "b1": sc * jax.random.normal(ks[7], (D_FF,), jnp.float32),
        "w2": sc * jax.random.normal(ks[8], (D_MODEL, D_FF), jnp.float32),
        "b2": sc * jax.random.normal(ks[9], (D_MODEL,), jnp.float32),
        "gamma": jnp.ones((3, D_MODEL), jnp.float32),   # LayerNorm default init
        "beta": jnp.zeros((3, D_MODEL), jnp.float32),
    }

    fn = jax.jit(decoder_layer)
    out = fn(x, enc_output, src_mask, tgt_mask, params)
    out = jax.block_until_ready(out)

    ref = decoder_layer_reference(x, enc_output, src_mask, tgt_mask, params)
    assert out.shape == (B, S, D_MODEL)
    # Exact (non-approx) softmax divide and f32 everywhere -> tight tolerance.
    assert jnp.allclose(out, ref, atol=1e-4, rtol=1e-4), "mismatch vs reference"

    print("KERNEL_OK")
</pallas_src>

<mosaic_0001>
module attributes {stable_mosaic.version = 11 : i64} {
  func.func @decoder_layer_kernel(%arg0: i32, %arg1: memref<2x16x32xf32, #tpu.memory_space<vmem>>, %arg2: memref<2x16x16xf32, #tpu.memory_space<vmem>>, %arg3: memref<32x256xf32, #tpu.memory_space<vmem>>, %arg4: memref<1x256xf32, #tpu.memory_space<vmem>>, %arg5: memref<128x32xf32, #tpu.memory_space<vmem>>, %arg6: memref<9x32xf32, #tpu.memory_space<vmem>>, %arg7: memref<16x32xf32, #tpu.memory_space<vmem>>) attributes {dimension_semantics = [#tpu.dimension_semantics<arbitrary>], iteration_bounds = array<i64: 1>, scalar_prefetch = 0 : i64, scratch_operands = 0 : i64, tpu.core_type = #tpu.core_type<tc>, window_params = [{pipeline_mode = #tpu.pipeline_mode<synchronous>, transform_indices = @transform_0, window_bounds = array<i64: 2, 16, 32>}, {pipeline_mode = #tpu.pipeline_mode<synchronous>, transform_indices = @transform_1, window_bounds = array<i64: 2, 16, 16>}, {pipeline_mode = #tpu.pipeline_mode<synchronous>, transform_indices = @transform_2, window_bounds = array<i64: 32, 256>}, {pipeline_mode = #tpu.pipeline_mode<synchronous>, transform_indices = @transform_3, window_bounds = array<i64: 1, 256>}, {pipeline_mode = #tpu.pipeline_mode<synchronous>, transform_indices = @transform_4, window_bounds = array<i64: 128, 32>}, {pipeline_mode = #tpu.pipeline_mode<synchronous>, transform_indices = @transform_5, window_bounds = array<i64: 9, 32>}, {pipeline_mode = #tpu.pipeline_mode<synchronous>, transform_indices = @transform_6, window_bounds = array<i64: 16, 32>}]} {
    %c0 = arith.constant 0 : index
    %c0_0 = arith.constant 0 : index
    %c0_1 = arith.constant 0 : index
    %0 = vector.load %arg1[%c0, %c0_0, %c0_1] : memref<2x16x32xf32, #tpu.memory_space<vmem>>, vector<1x16x32xf32>
    %1 = vector.shape_cast %0 : vector<1x16x32xf32> to vector<16x32xf32>
    %c1 = arith.constant 1 : index
    %c0_2 = arith.constant 0 : index
    %c0_3 = arith.constant 0 : index
    %2 = vector.load %arg1[%c1, %c0_2, %c0_3] : memref<2x16x32xf32, #tpu.memory_space<vmem>>, vector<1x16x32xf32>
    %3 = vector.shape_cast %2 : vector<1x16x32xf32> to vector<16x32xf32>
    %c0_4 = arith.constant 0 : index
    %c0_5 = arith.constant 0 : index
    %c0_6 = arith.constant 0 : index
    %4 = vector.load %arg2[%c0_4, %c0_5, %c0_6] : memref<2x16x16xf32, #tpu.memory_space<vmem>>, vector<1x16x16xf32>
    %5 = vector.shape_cast %4 : vector<1x16x16xf32> to vector<16x16xf32>
    %c1_7 = arith.constant 1 : index
    %c0_8 = arith.constant 0 : index
    %c0_9 = arith.constant 0 : index
    %6 = vector.load %arg2[%c1_7, %c0_8, %c0_9] : memref<2x16x16xf32, #tpu.memory_space<vmem>>, vector<1x16x16xf32>
    %7 = vector.shape_cast %6 : vector<1x16x16xf32> to vector<16x16xf32>
    %c0_10 = arith.constant 0 : index
    %c0_11 = arith.constant 0 : index
    %8 = vector.load %arg6[%c0_10, %c0_11] : memref<9x32xf32, #tpu.memory_space<vmem>>, vector<1x32xf32>
    %c1_12 = arith.constant 1 : index
    %c0_13 = arith.constant 0 : index
    %9 = vector.load %arg6[%c1_12, %c0_13] : memref<9x32xf32, #tpu.memory_space<vmem>>, vector<1x32xf32>
    %c2 = arith.constant 2 : index
    %c0_14 = arith.constant 0 : index
    %10 = vector.load %arg6[%c2, %c0_14] : memref<9x32xf32, #tpu.memory_space<vmem>>, vector<1x32xf32>
    %c0_15 = arith.constant 0 : index
    %c0_16 = arith.constant 0 : index
    %11 = vector.load %arg3[%c0_15, %c0_16] : memref<32x256xf32, #tpu.memory_space<vmem>>, vector<32x96xf32>
    %cst = arith.constant dense<0.000000e+00> : vector<16x96xf32>
    %12 = tpu.matmul %1, %11, %cst {dimension_numbers = #tpu.dot_dimension_numbers<[1], [0], [0], [1], [0, 0, 1, 1], [], []>} : vector<16x32xf32>, vector<32x96xf32>, vector<16x96xf32> -> vector<16x96xf32>
    %c0_17 = arith.constant 0 : index
    %c0_18 = arith.constant 0 : index
    %13 = vector.load %arg4[%c0_17, %c0_18] : memref<1x256xf32, #tpu.memory_space<vmem>>, vector<1x96xf32>
    %14 = vector.broadcast %13 : vector<1x96xf32> to vector<16x96xf32>
    %15 = arith.addf %12, %14 : vector<16x96xf32>
    %16 = vector.extract_strided_slice %15 {offsets = [0, 0], sizes = [16, 32], strides = [1, 1]} : vector<16x96xf32> to vector<16x32xf32>
    %17 = vector.extract_strided_slice %15 {offsets = [0, 32], sizes = [16, 64], strides = [1, 1]} : vector<16x96xf32> to vector<16x64xf32>
    %c0_19 = arith.constant 0 : index
    %c0_20 = arith.constant 0 : index
    %18 = vector.load %arg5[%c0_19, %c0_20] : memref<128x32xf32, #tpu.memory_space<vmem>>, vector<32x32xf32>
    %19 = vector.extract_strided_slice %16 {offsets = [0, 0], sizes = [16, 8], strides = [1, 1]} : vector<16x32xf32> to vector<16x8xf32>
    %20 = vector.extract_strided_slice %17 {offsets = [0, 0], sizes = [16, 8], strides = [1, 1]} : vector<16x64xf32> to vector<16x8xf32>
    %21 = vector.extract_strided_slice %17 {offsets = [0, 32], sizes = [16, 8], strides = [1, 1]} : vector<16x64xf32> to vector<16x8xf32>
    "tpu.trace_start"() <{level = 10 : i32, message = "qe,ke->qk"}> : () -> ()
    %cst_21 = arith.constant dense<0.000000e+00> : vector<16x16xf32>
    %22 = tpu.matmul %19, %20, %cst_21 {dimension_numbers = #tpu.dot_dimension_numbers<[1], [1], [0], [0], [0, 0, 1, 0], [], []>} : vector<16x8xf32>, vector<16x8xf32>, vector<16x16xf32> -> vector<16x16xf32>
    "tpu.trace_stop"() : () -> ()
    %23 = arith.addf %22, %5 : vector<16x16xf32>
    %cst_22 = arith.constant dense<0xFF800000> : vector<16xf32>
    %24 = vector.multi_reduction <maximumf>, %23, %cst_22 [1] : vector<16x16xf32> to vector<16xf32>
    %25 = vector.shape_cast %24 : vector<16xf32> to vector<16x1xf32>
    %26 = vector.broadcast %25 : vector<16x1xf32> to vector<16x16xf32>
    %27 = arith.subf %23, %26 : vector<16x16xf32>
    %28 = math.exp %27 : vector<16x16xf32>
    %cst_23 = arith.constant dense<0.000000e+00> : vector<16xf32>
    %29 = vector.multi_reduction <add>, %28, %cst_23 [1] : vector<16x16xf32> to vector<16xf32>
    %30 = vector.shape_cast %29 : vector<16xf32> to vector<16x1xf32>
    %31 = vector.broadcast %30 : vector<16x1xf32> to vector<16x16xf32>
    %32 = arith.divf %28, %31 : vector<16x16xf32>
    %cst_24 = arith.constant dense<0.000000e+00> : vector<16x8xf32>
    %33 = tpu.matmul %32, %21, %cst_24 {dimension_numbers = #tpu.dot_dimension_numbers<[1], [0], [0], [1], [0, 0, 1, 1], [], []>} : vector<16x16xf32>, vector<16x8xf32>, vector<16x8xf32> -> vector<16x8xf32>
    %34 = vector.extract_strided_slice %18 {offsets = [0, 0], sizes = [8, 32], strides = [1, 1]} : vector<32x32xf32> to vector<8x32xf32>
    %cst_25 = arith.constant dense<0.000000e+00> : vector<16x32xf32>
    %35 = tpu.matmul %33, %34, %cst_25 {dimension_numbers = #tpu.dot_dimension_numbers<[1], [0], [0], [1], [0, 0, 1, 1], [], []>} : vector<16x8xf32>, vector<8x32xf32>, vector<16x32xf32> -> vector<16x32xf32>
    %36 = vector.extract_strided_slice %16 {offsets = [0, 8], sizes = [16, 8], strides = [1, 1]} : vector<16x32xf32> to vector<16x8xf32>
    %37 = vector.extract_strided_slice %17 {offsets = [0, 8], sizes = [16, 8], strides = [1, 1]} : vector<16x64xf32> to vector<16x8xf32>
    %38 = vector.extract_strided_slice %17 {offsets = [0, 40], sizes = [16, 8], strides = [1, 1]} : vector<16x64xf32> to vector<16x8xf32>
    "tpu.trace_start"() <{level = 10 : i32, message = "qe,ke->qk"}> : () -> ()
    %cst_26 = arith.constant dense<0.000000e+00> : vector<16x16xf32>
    %39 = tpu.matmul %36, %37, %cst_26 {dimension_numbers = #tpu.dot_dimension_numbers<[1], [1], [0], [0], [0, 0, 1, 0], [], []>} : vector<16x8xf32>, vector<16x8xf32>, vector<16x16xf32> -> vector<16x16xf32>
    "tpu.trace_stop"() : () -> ()
    %40 = arith.addf %39, %5 : vector<16x16xf32>
    %cst_27 = arith.constant dense<0xFF800000> : vector<16xf32>
    %41 = vector.multi_reduction <maximumf>, %40, %cst_27 [1] : vector<16x16xf32> to vector<16xf32>
    %42 = vector.shape_cast %41 : vector<16xf32> to vector<16x1xf32>
    %43 = vector.broadcast %42 : vector<16x1xf32> to vector<16x16xf32>
    %44 = arith.subf %40, %43 : vector<16x16xf32>
    %45 = math.exp %44 : vector<16x16xf32>
    %cst_28 = arith.constant dense<0.000000e+00> : vector<16xf32>
    %46 = vector.multi_reduction <add>, %45, %cst_28 [1] : vector<16x16xf32> to vector<16xf32>
    %47 = vector.shape_cast %46 : vector<16xf32> to vector<16x1xf32>
    %48 = vector.broadcast %47 : vector<16x1xf32> to vector<16x16xf32>
    %49 = arith.divf %45, %48 : vector<16x16xf32>
    %cst_29 = arith.constant dense<0.000000e+00> : vector<16x8xf32>
    %50 = tpu.matmul %49, %38, %cst_29 {dimension_numbers = #tpu.dot_dimension_numbers<[1], [0], [0], [1], [0, 0, 1, 1], [], []>} : vector<16x16xf32>, vector<16x8xf32>, vector<16x8xf32> -> vector<16x8xf32>
    %51 = vector.extract_strided_slice %18 {offsets = [8, 0], sizes = [8, 32], strides = [1, 1]} : vector<32x32xf32> to vector<8x32xf32>
    %cst_30 = arith.constant dense<0.000000e+00> : vector<16x32xf32>
    %52 = tpu.matmul %50, %51, %cst_30 {dimension_numbers = #tpu.dot_dimension_numbers<[1], [0], [0], [1], [0, 0, 1, 1], [], []>} : vector<16x8xf32>, vector<8x32xf32>, vector<16x32xf32> -> vector<16x32xf32>
    %53 = arith.addf %35, %52 : vector<16x32xf32>
    %54 = vector.extract_strided_slice %16 {offsets = [0, 16], sizes = [16, 8], strides = [1, 1]} : vector<16x32xf32> to vector<16x8xf32>
    %55 = vector.extract_strided_slice %17 {offsets = [0, 16], sizes = [16, 8], strides = [1, 1]} : vector<16x64xf32> to vector<16x8xf32>
    %56 = vector.extract_strided_slice %17 {offsets = [0, 48], sizes = [16, 8], strides = [1, 1]} : vector<16x64xf32> to vector<16x8xf32>
    "tpu.trace_start"() <{level = 10 : i32, message = "qe,ke->qk"}> : () -> ()
    %cst_31 = arith.constant dense<0.000000e+00> : vector<16x16xf32>
    %57 = tpu.matmul %54, %55, %cst_31 {dimension_numbers = #tpu.dot_dimension_numbers<[1], [1], [0], [0], [0, 0, 1, 0], [], []>} : vector<16x8xf32>, vector<16x8xf32>, vector<16x16xf32> -> vector<16x16xf32>
    "tpu.trace_stop"() : () -> ()
    %58 = arith.addf %57, %5 : vector<16x16xf32>
    %cst_32 = arith.constant dense<0xFF800000> : vector<16xf32>
    %59 = vector.multi_reduction <maximumf>, %58, %cst_32 [1] : vector<16x16xf32> to vector<16xf32>
    %60 = vector.shape_cast %59 : vector<16xf32> to vector<16x1xf32>
    %61 = vector.broadcast %60 : vector<16x1xf32> to vector<16x16xf32>
    %62 = arith.subf %58, %61 : vector<16x16xf32>
    %63 = math.exp %62 : vector<16x16xf32>
    %cst_33 = arith.constant dense<0.000000e+00> : vector<16xf32>
    %64 = vector.multi_reduction <add>, %63, %cst_33 [1] : vector<16x16xf32> to vector<16xf32>
    %65 = vector.shape_cast %64 : vector<16xf32> to vector<16x1xf32>
    %66 = vector.broadcast %65 : vector<16x1xf32> to vector<16x16xf32>
    %67 = arith.divf %63, %66 : vector<16x16xf32>
    %cst_34 = arith.constant dense<0.000000e+00> : vector<16x8xf32>
    %68 = tpu.matmul %67, %56, %cst_34 {dimension_numbers = #tpu.dot_dimension_numbers<[1], [0], [0], [1], [0, 0, 1, 1], [], []>} : vector<16x16xf32>, vector<16x8xf32>, vector<16x8xf32> -> vector<16x8xf32>
    %69 = vector.extract_strided_slice %18 {offsets = [16, 0], sizes = [8, 32], strides = [1, 1]} : vector<32x32xf32> to vector<8x32xf32>
    %cst_35 = arith.constant dense<0.000000e+00> : vector<16x32xf32>
    %70 = tpu.matmul %68, %69, %cst_35 {dimension_numbers = #tpu.dot_dimension_numbers<[1], [0], [0], [1], [0, 0, 1, 1], [], []>} : vector<16x8xf32>, vector<8x32xf32>, vector<16x32xf32> -> vector<16x32xf32>
    %71 = arith.addf %53, %70 : vector<16x32xf32>
    %72 = vector.extract_strided_slice %16 {offsets = [0, 24], sizes = [16, 8], strides = [1, 1]} : vector<16x32xf32> to vector<16x8xf32>
    %73 = vector.extract_strided_slice %17 {offsets = [0, 24], sizes = [16, 8], strides = [1, 1]} : vector<16x64xf32> to vector<16x8xf32>
    %74 = vector.extract_strided_slice %17 {offsets = [0, 56], sizes = [16, 8], strides = [1, 1]} : vector<16x64xf32> to vector<16x8xf32>
    "tpu.trace_start"() <{level = 10 : i32, message = "qe,ke->qk"}> : () -> ()
    %cst_36 = arith.constant dense<0.000000e+00> : vector<16x16xf32>
    %75 = tpu.matmul %72, %73, %cst_36 {dimension_numbers = #tpu.dot_dimension_numbers<[1], [1], [0], [0], [0, 0, 1, 0], [], []>} : vector<16x8xf32>, vector<16x8xf32>, vector<16x16xf32> -> vector<16x16xf32>
    "tpu.trace_stop"() : () -> ()
    %76 = arith.addf %75, %5 : vector<16x16xf32>
    %cst_37 = arith.constant dense<0xFF800000> : vector<16xf32>
    %77 = vector.multi_reduction <maximumf>, %76, %cst_37 [1] : vector<16x16xf32> to vector<16xf32>
    %78 = vector.shape_cast %77 : vector<16xf32> to vector<16x1xf32>
    %79 = vector.broadcast %78 : vector<16x1xf32> to vector<16x16xf32>
    %80 = arith.subf %76, %79 : vector<16x16xf32>
    %81 = math.exp %80 : vector<16x16xf32>
    %cst_38 = arith.constant dense<0.000000e+00> : vector<16xf32>
    %82 = vector.multi_reduction <add>, %81, %cst_38 [1] : vector<16x16xf32> to vector<16xf32>
    %83 = vector.shape_cast %82 : vector<16xf32> to vector<16x1xf32>
    %84 = vector.broadcast %83 : vector<16x1xf32> to vector<16x16xf32>
    %85 = arith.divf %81, %84 : vector<16x16xf32>
    %cst_39 = arith.constant dense<0.000000e+00> : vector<16x8xf32>
    %86 = tpu.matmul %85, %74, %cst_39 {dimension_numbers = #tpu.dot_dimension_numbers<[1], [0], [0], [1], [0, 0, 1, 1], [], []>} : vector<16x16xf32>, vector<16x8xf32>, vector<16x8xf32> -> vector<16x8xf32>
    %87 = vector.extract_strided_slice %18 {offsets = [24, 0], sizes = [8, 32], strides = [1, 1]} : vector<32x32xf32> to vector<8x32xf32>
    %cst_40 = arith.constant dense<0.000000e+00> : vector<16x32xf32>
    %88 = tpu.matmul %86, %87, %cst_40 {dimension_numbers = #tpu.dot_dimension_numbers<[1], [0], [0], [1], [0, 0, 1, 1], [], []>} : vector<16x8xf32>, vector<8x32xf32>, vector<16x32xf32> -> vector<16x32xf32>
    %89 = arith.addf %71, %88 : vector<16x32xf32>
    %90 = vector.broadcast %8 : vector<1x32xf32> to vector<16x32xf32>
    %91 = arith.addf %89, %90 : vector<16x32xf32>
    %92 = arith.addf %1, %91 : vector<16x32xf32>
    %c3 = arith.constant 3 : index
    %c0_41 = arith.constant 0 : index
    %93 = vector.load %arg6[%c3, %c0_41] : memref<9x32xf32, #tpu.memory_space<vmem>>, vector<1x32xf32>
    %c6 = arith.constant 6 : index
    %c0_42 = arith.constant 0 : index
    %94 = vector.load %arg6[%c6, %c0_42] : memref<9x32xf32, #tpu.memory_space<vmem>>, vector<1x32xf32>
    %cst_43 = arith.constant dense<0.000000e+00> : vector<16xf32>
    %95 = vector.multi_reduction <add>, %92, %cst_43 [1] : vector<16x32xf32> to vector<16xf32>
    %96 = vector.shape_cast %95 : vector<16xf32> to vector<16x1xf32>
    %cst_44 = arith.constant 3.200000e+01 : f32
    %97 = vector.broadcast %cst_44 : f32 to vector<16x1xf32>
    %98 = arith.divf %96, %97 : vector<16x1xf32>
    %99 = vector.broadcast %98 : vector<16x1xf32> to vector<16x32xf32>
    %100 = arith.subf %92, %99 : vector<16x32xf32>
    %101 = arith.mulf %100, %100 : vector<16x32xf32>
    %cst_45 = arith.constant dense<0.000000e+00> : vector<16xf32>
    %102 = vector.multi_reduction <add>, %101, %cst_45 [1] : vector<16x32xf32> to vector<16xf32>
    %103 = vector.shape_cast %102 : vector<16xf32> to vector<16x1xf32>
    %cst_46 = arith.constant 3.200000e+01 : f32
    %104 = vector.broadcast %cst_46 : f32 to vector<16x1xf32>
    %105 = arith.divf %103, %104 : vector<16x1xf32>
    %106 = vector.broadcast %98 : vector<16x1xf32> to vector<16x32xf32>
    %107 = arith.subf %92, %106 : vector<16x32xf32>
    %cst_47 = arith.constant 9.99999974E-6 : f32
    %108 = vector.broadcast %cst_47 : f32 to vector<16x1xf32>
    %109 = arith.addf %105, %108 : vector<16x1xf32>
    %110 = math.rsqrt %109 : vector<16x1xf32>
    %111 = vector.broadcast %110 : vector<16x1xf32> to vector<16x32xf32>
    %112 = arith.mulf %107, %111 : vector<16x32xf32>
    %113 = vector.broadcast %93 : vector<1x32xf32> to vector<16x32xf32>
    %114 = arith.mulf %112, %113 : vector<16x32xf32>
    %115 = vector.broadcast %94 : vector<1x32xf32> to vector<16x32xf32>
    %116 = arith.addf %114, %115 : vector<16x32xf32>
    %c0_48 = arith.constant 0 : index
    %c96 = arith.constant 96 : index
    %117 = vector.load %arg3[%c0_48, %c96] : memref<32x256xf32, #tpu.memory_space<vmem>>, vector<32x32xf32>
    %cst_49 = arith.constant dense<0.000000e+00> : vector<16x32xf32>
    %118 = tpu.matmul %116, %117, %cst_49 {dimension_numbers = #tpu.dot_dimension_numbers<[1], [0], [0], [1], [0, 0, 1, 1], [], []>} : vector<16x32xf32>, vector<32x32xf32>, vector<16x32xf32> -> vector<16x32xf32>
    %c0_50 = arith.constant 0 : index
    %c96_51 = arith.constant 96 : index
    %119 = vector.load %arg4[%c0_50, %c96_51] : memref<1x256xf32, #tpu.memory_space<vmem>>, vector<1x32xf32>
    %120 = vector.broadcast %119 : vector<1x32xf32> to vector<16x32xf32>
    %121 = arith.addf %118, %120 : vector<16x32xf32>
    %c0_52 = arith.constant 0 : index
    %c128 = arith.constant 128 : index
    %122 = vector.load %arg3[%c0_52, %c128] : memref<32x256xf32, #tpu.memory_space<vmem>>, vector<32x64xf32>
    %cst_53 = arith.constant dense<0.000000e+00> : vector<16x64xf32>
    %123 = tpu.matmul %3, %122, %cst_53 {dimension_numbers = #tpu.dot_dimension_numbers<[1], [0], [0], [1], [0, 0, 1, 1], [], []>} : vector<16x32xf32>, vector<32x64xf32>, vector<16x64xf32> -> vector<16x64xf32>
    %c0_54 = arith.constant 0 : index
    %c128_55 = arith.constant 128 : index
    %124 = vector.load %arg4[%c0_54, %c128_55] : memref<1x256xf32, #tpu.memory_space<vmem>>, vector<1x64xf32>
    %125 = vector.broadcast %124 : vector<1x64xf32> to vector<16x64xf32>
    %126 = arith.addf %123, %125 : vector<16x64xf32>
    %c32 = arith.constant 32 : index
    %c0_56 = arith.constant 0 : index
    %127 = vector.load %arg5[%c32, %c0_56] : memref<128x32xf32, #tpu.memory_space<vmem>>, vector<32x32xf32>
    %128 = vector.extract_strided_slice %121 {offsets = [0, 0], sizes = [16, 8], strides = [1, 1]} : vector<16x32xf32> to vector<16x8xf32>
    %129 = vector.extract_strided_slice %126 {offsets = [0, 0], sizes = [16, 8], strides = [1, 1]} : vector<16x64xf32> to vector<16x8xf32>
    %130 = vector.extract_strided_slice %126 {offsets = [0, 32], sizes = [16, 8], strides = [1, 1]} : vector<16x64xf32> to vector<16x8xf32>
    "tpu.trace_start"() <{level = 10 : i32, message = "qe,ke->qk"}> : () -> ()
    %cst_57 = arith.constant dense<0.000000e+00> : vector<16x16xf32>
    %131 = tpu.matmul %128, %129, %cst_57 {dimension_numbers = #tpu.dot_dimension_numbers<[1], [1], [0], [0], [0, 0, 1, 0], [], []>} : vector<16x8xf32>, vector<16x8xf32>, vector<16x16xf32> -> vector<16x16xf32>
    "tpu.trace_stop"() : () -> ()
    %132 = arith.addf %131, %7 : vector<16x16xf32>
    %cst_58 = arith.constant dense<0xFF800000> : vector<16xf32>
    %133 = vector.multi_reduction <maximumf>, %132, %cst_58 [1] : vector<16x16xf32> to vector<16xf32>
    %134 = vector.shape_cast %133 : vector<16xf32> to vector<16x1xf32>
    %135 = vector.broadcast %134 : vector<16x1xf32> to vector<16x16xf32>
    %136 = arith.subf %132, %135 : vector<16x16xf32>
    %137 = math.exp %136 : vector<16x16xf32>
    %cst_59 = arith.constant dense<0.000000e+00> : vector<16xf32>
    %138 = vector.multi_reduction <add>, %137, %cst_59 [1] : vector<16x16xf32> to vector<16xf32>
    %139 = vector.shape_cast %138 : vector<16xf32> to vector<16x1xf32>
    %140 = vector.broadcast %139 : vector<16x1xf32> to vector<16x16xf32>
    %141 = arith.divf %137, %140 : vector<16x16xf32>
    %cst_60 = arith.constant dense<0.000000e+00> : vector<16x8xf32>
    %142 = tpu.matmul %141, %130, %cst_60 {dimension_numbers = #tpu.dot_dimension_numbers<[1], [0], [0], [1], [0, 0, 1, 1], [], []>} : vector<16x16xf32>, vector<16x8xf32>, vector<16x8xf32> -> vector<16x8xf32>
    %143 = vector.extract_strided_slice %127 {offsets = [0, 0], sizes = [8, 32], strides = [1, 1]} : vector<32x32xf32> to vector<8x32xf32>
    %cst_61 = arith.constant dense<0.000000e+00> : vector<16x32xf32>
    %144 = tpu.matmul %142, %143, %cst_61 {dimension_numbers = #tpu.dot_dimension_numbers<[1], [0], [0], [1], [0, 0, 1, 1], [], []>} : vector<16x8xf32>, vector<8x32xf32>, vector<16x32xf32> -> vector<16x32xf32>
    %145 = vector.extract_strided_slice %121 {offsets = [0, 8], sizes = [16, 8], strides = [1, 1]} : vector<16x32xf32> to vector<16x8xf32>
    %146 = vector.extract_strided_slice %126 {offsets = [0, 8], sizes = [16, 8], strides = [1, 1]} : vector<16x64xf32> to vector<16x8xf32>
    %147 = vector.extract_strided_slice %126 {offsets = [0, 40], sizes = [16, 8], strides = [1, 1]} : vector<16x64xf32> to vector<16x8xf32>
    "tpu.trace_start"() <{level = 10 : i32, message = "qe,ke->qk"}> : () -> ()
    %cst_62 = arith.constant dense<0.000000e+00> : vector<16x16xf32>
    %148 = tpu.matmul %145, %146, %cst_62 {dimension_numbers = #tpu.dot_dimension_numbers<[1], [1], [0], [0], [0, 0, 1, 0], [], []>} : vector<16x8xf32>, vector<16x8xf32>, vector<16x16xf32> -> vector<16x16xf32>
    "tpu.trace_stop"() : () -> ()
    %149 = arith.addf %148, %7 : vector<16x16xf32>
    %cst_63 = arith.constant dense<0xFF800000> : vector<16xf32>
    %150 = vector.multi_reduction <maximumf>, %149, %cst_63 [1] : vector<16x16xf32> to vector<16xf32>
    %151 = vector.shape_cast %150 : vector<16xf32> to vector<16x1xf32>
    %152 = vector.broadcast %151 : vector<16x1xf32> to vector<16x16xf32>
    %153 = arith.subf %149, %152 : vector<16x16xf32>
    %154 = math.exp %153 : vector<16x16xf32>
    %cst_64 = arith.constant dense<0.000000e+00> : vector<16xf32>
    %155 = vector.multi_reduction <add>, %154, %cst_64 [1] : vector<16x16xf32> to vector<16xf32>
    %156 = vector.shape_cast %155 : vector<16xf32> to vector<16x1xf32>
    %157 = vector.broadcast %156 : vector<16x1xf32> to vector<16x16xf32>
    %158 = arith.divf %154, %157 : vector<16x16xf32>
    %cst_65 = arith.constant dense<0.000000e+00> : vector<16x8xf32>
    %159 = tpu.matmul %158, %147, %cst_65 {dimension_numbers = #tpu.dot_dimension_numbers<[1], [0], [0], [1], [0, 0, 1, 1], [], []>} : vector<16x16xf32>, vector<16x8xf32>, vector<16x8xf32> -> vector<16x8xf32>
    %160 = vector.extract_strided_slice %127 {offsets = [8, 0], sizes = [8, 32], strides = [1, 1]} : vector<32x32xf32> to vector<8x32xf32>
    %cst_66 = arith.constant dense<0.000000e+00> : vector<16x32xf32>
    %161 = tpu.matmul %159, %160, %cst_66 {dimension_numbers = #tpu.dot_dimension_numbers<[1], [0], [0], [1], [0, 0, 1, 1], [], []>} : vector<16x8xf32>, vector<8x32xf32>, vector<16x32xf32> -> vector<16x32xf32>
    %162 = arith.addf %144, %161 : vector<16x32xf32>
    %163 = vector.extract_strided_slice %121 {offsets = [0, 16], sizes = [16, 8], strides = [1, 1]} : vector<16x32xf32> to vector<16x8xf32>
    %164 = vector.extract_strided_slice %126 {offsets = [0, 16], sizes = [16, 8], strides = [1, 1]} : vector<16x64xf32> to vector<16x8xf32>
    %165 = vector.extract_strided_slice %126 {offsets = [0, 48], sizes = [16, 8], strides = [1, 1]} : vector<16x64xf32> to vector<16x8xf32>
    "tpu.trace_start"() <{level = 10 : i32, message = "qe,ke->qk"}> : () -> ()
    %cst_67 = arith.constant dense<0.000000e+00> : vector<16x16xf32>
    %166 = tpu.matmul %163, %164, %cst_67 {dimension_numbers = #tpu.dot_dimension_numbers<[1], [1], [0], [0], [0, 0, 1, 0], [], []>} : vector<16x8xf32>, vector<16x8xf32>, vector<16x16xf32> -> vector<16x16xf32>
    "tpu.trace_stop"() : () -> ()
    %167 = arith.addf %166, %7 : vector<16x16xf32>
    %cst_68 = arith.constant dense<0xFF800000> : vector<16xf32>
    %168 = vector.multi_reduction <maximumf>, %167, %cst_68 [1] : vector<16x16xf32> to vector<16xf32>
    %169 = vector.shape_cast %168 : vector<16xf32> to vector<16x1xf32>
    %170 = vector.broadcast %169 : vector<16x1xf32> to vector<16x16xf32>
    %171 = arith.subf %167, %170 : vector<16x16xf32>
    %172 = math.exp %171 : vector<16x16xf32>
    %cst_69 = arith.constant dense<0.000000e+00> : vector<16xf32>
    %173 = vector.multi_reduction <add>, %172, %cst_69 [1] : vector<16x16xf32> to vector<16xf32>
    %174 = vector.shape_cast %173 : vector<16xf32> to vector<16x1xf32>
    %175 = vector.broadcast %174 : vector<16x1xf32> to vector<16x16xf32>
    %176 = arith.divf %172, %175 : vector<16x16xf32>
    %cst_70 = arith.constant dense<0.000000e+00> : vector<16x8xf32>
    %177 = tpu.matmul %176, %165, %cst_70 {dimension_numbers = #tpu.dot_dimension_numbers<[1], [0], [0], [1], [0, 0, 1, 1], [], []>} : vector<16x16xf32>, vector<16x8xf32>, vector<16x8xf32> -> vector<16x8xf32>
    %178 = vector.extract_strided_slice %127 {offsets = [16, 0], sizes = [8, 32], strides = [1, 1]} : vector<32x32xf32> to vector<8x32xf32>
    %cst_71 = arith.constant dense<0.000000e+00> : vector<16x32xf32>
    %179 = tpu.matmul %177, %178, %cst_71 {dimension_numbers = #tpu.dot_dimension_numbers<[1], [0], [0], [1], [0, 0, 1, 1], [], []>} : vector<16x8xf32>, vector<8x32xf32>, vector<16x32xf32> -> vector<16x32xf32>
    %180 = arith.addf %162, %179 : vector<16x32xf32>
    %181 = vector.extract_strided_slice %121 {offsets = [0, 24], sizes = [16, 8], strides = [1, 1]} : vector<16x32xf32> to vector<16x8xf32>
    %182 = vector.extract_strided_slice %126 {offsets = [0, 24], sizes = [16, 8], strides = [1, 1]} : vector<16x64xf32> to vector<16x8xf32>
    %183 = vector.extract_strided_slice %126 {offsets = [0, 56], sizes = [16, 8], strides = [1, 1]} : vector<16x64xf32> to vector<16x8xf32>
    "tpu.trace_start"() <{level = 10 : i32, message = "qe,ke->qk"}> : () -> ()
    %cst_72 = arith.constant dense<0.000000e+00> : vector<16x16xf32>
    %184 = tpu.matmul %181, %182, %cst_72 {dimension_numbers = #tpu.dot_dimension_numbers<[1], [1], [0], [0], [0, 0, 1, 0], [], []>} : vector<16x8xf32>, vector<16x8xf32>, vector<16x16xf32> -> vector<16x16xf32>
    "tpu.trace_stop"() : () -> ()
    %185 = arith.addf %184, %7 : vector<16x16xf32>
    %cst_73 = arith.constant dense<0xFF800000> : vector<16xf32>
    %186 = vector.multi_reduction <maximumf>, %185, %cst_73 [1] : vector<16x16xf32> to vector<16xf32>
    %187 = vector.shape_cast %186 : vector<16xf32> to vector<16x1xf32>
    %188 = vector.broadcast %187 : vector<16x1xf32> to vector<16x16xf32>
    %189 = arith.subf %185, %188 : vector<16x16xf32>
    %190 = math.exp %189 : vector<16x16xf32>
    %cst_74 = arith.constant dense<0.000000e+00> : vector<16xf32>
    %191 = vector.multi_reduction <add>, %190, %cst_74 [1] : vector<16x16xf32> to vector<16xf32>
    %192 = vector.shape_cast %191 : vector<16xf32> to vector<16x1xf32>
    %193 = vector.broadcast %192 : vector<16x1xf32> to vector<16x16xf32>
    %194 = arith.divf %190, %193 : vector<16x16xf32>
    %cst_75 = arith.constant dense<0.000000e+00> : vector<16x8xf32>
    %195 = tpu.matmul %194, %183, %cst_75 {dimension_numbers = #tpu.dot_dimension_numbers<[1], [0], [0], [1], [0, 0, 1, 1], [], []>} : vector<16x16xf32>, vector<16x8xf32>, vector<16x8xf32> -> vector<16x8xf32>
    %196 = vector.extract_strided_slice %127 {offsets = [24, 0], sizes = [8, 32], strides = [1, 1]} : vector<32x32xf32> to vector<8x32xf32>
    %cst_76 = arith.constant dense<0.000000e+00> : vector<16x32xf32>
    %197 = tpu.matmul %195, %196, %cst_76 {dimension_numbers = #tpu.dot_dimension_numbers<[1], [0], [0], [1], [0, 0, 1, 1], [], []>} : vector<16x8xf32>, vector<8x32xf32>, vector<16x32xf32> -> vector<16x32xf32>
    %198 = arith.addf %180, %197 : vector<16x32xf32>
    %199 = vector.broadcast %9 : vector<1x32xf32> to vector<16x32xf32>
    %200 = arith.addf %198, %199 : vector<16x32xf32>
    %201 = arith.addf %116, %200 : vector<16x32xf32>
    %c4 = arith.constant 4 : index
    %c0_77 = arith.constant 0 : index
    %202 = vector.load %arg6[%c4, %c0_77] : memref<9x32xf32, #tpu.memory_space<vmem>>, vector<1x32xf32>
    %c7 = arith.constant 7 : index
    %c0_78 = arith.constant 0 : index
    %203 = vector.load %arg6[%c7, %c0_78] : memref<9x32xf32, #tpu.memory_space<vmem>>, vector<1x32xf32>
    %cst_79 = arith.constant dense<0.000000e+00> : vector<16xf32>
    %204 = vector.multi_reduction <add>, %201, %cst_79 [1] : vector<16x32xf32> to vector<16xf32>
    %205 = vector.shape_cast %204 : vector<16xf32> to vector<16x1xf32>
    %cst_80 = arith.constant 3.200000e+01 : f32
    %206 = vector.broadcast %cst_80 : f32 to vector<16x1xf32>
    %207 = arith.divf %205, %206 : vector<16x1xf32>
    %208 = vector.broadcast %207 : vector<16x1xf32> to vector<16x32xf32>
    %209 = arith.subf %201, %208 : vector<16x32xf32>
    %210 = arith.mulf %209, %209 : vector<16x32xf32>
    %cst_81 = arith.constant dense<0.000000e+00> : vector<16xf32>
    %211 = vector.multi_reduction <add>, %210, %cst_81 [1] : vector<16x32xf32> to vector<16xf32>
    %212 = vector.shape_cast %211 : vector<16xf32> to vector<16x1xf32>
    %cst_82 = arith.constant 3.200000e+01 : f32
    %213 = vector.broadcast %cst_82 : f32 to vector<16x1xf32>
    %214 = arith.divf %212, %213 : vector<16x1xf32>
    %215 = vector.broadcast %207 : vector<16x1xf32> to vector<16x32xf32>
    %216 = arith.subf %201, %215 : vector<16x32xf32>
    %cst_83 = arith.constant 9.99999974E-6 : f32
    %217 = vector.broadcast %cst_83 : f32 to vector<16x1xf32>
    %218 = arith.addf %214, %217 : vector<16x1xf32>
    %219 = math.rsqrt %218 : vector<16x1xf32>
    %220 = vector.broadcast %219 : vector<16x1xf32> to vector<16x32xf32>
    %221 = arith.mulf %216, %220 : vector<16x32xf32>
    %222 = vector.broadcast %202 : vector<1x32xf32> to vector<16x32xf32>
    %223 = arith.mulf %221, %222 : vector<16x32xf32>
    %224 = vector.broadcast %203 : vector<1x32xf32> to vector<16x32xf32>
    %225 = arith.addf %223, %224 : vector<16x32xf32>
    %c0_84 = arith.constant 0 : index
    %c192 = arith.constant 192 : index
    %226 = vector.load %arg3[%c0_84, %c192] : memref<32x256xf32, #tpu.memory_space<vmem>>, vector<32x64xf32>
    %cst_85 = arith.constant dense<0.000000e+00> : vector<16x64xf32>
    %227 = tpu.matmul %225, %226, %cst_85 {dimension_numbers = #tpu.dot_dimension_numbers<[1], [0], [0], [1], [0, 0, 1, 1], [], []>} : vector<16x32xf32>, vector<32x64xf32>, vector<16x64xf32> -> vector<16x64xf32>
    %c0_86 = arith.constant 0 : index
    %c192_87 = arith.constant 192 : index
    %228 = vector.load %arg4[%c0_86, %c192_87] : memref<1x256xf32, #tpu.memory_space<vmem>>, vector<1x64xf32>
    %229 = vector.broadcast %228 : vector<1x64xf32> to vector<16x64xf32>
    %230 = arith.addf %227, %229 : vector<16x64xf32>
    %cst_88 = arith.constant 0.000000e+00 : f32
    %231 = vector.broadcast %cst_88 : f32 to vector<16x64xf32>
    %232 = arith.maximumf %230, %231 : vector<16x64xf32>
    %c64 = arith.constant 64 : index
    %c0_89 = arith.constant 0 : index
    %233 = vector.load %arg5[%c64, %c0_89] : memref<128x32xf32, #tpu.memory_space<vmem>>, vector<64x32xf32>
    %cst_90 = arith.constant dense<0.000000e+00> : vector<16x32xf32>
    %234 = tpu.matmul %232, %233, %cst_90 {dimension_numbers = #tpu.dot_dimension_numbers<[1], [0], [0], [1], [0, 0, 1, 1], [], []>} : vector<16x64xf32>, vector<64x32xf32>, vector<16x32xf32> -> vector<16x32xf32>
    %235 = vector.broadcast %10 : vector<1x32xf32> to vector<16x32xf32>
    %236 = arith.addf %234, %235 : vector<16x32xf32>
    %237 = arith.addf %225, %236 : vector<16x32xf32>
    %c5 = arith.constant 5 : index
    %c0_91 = arith.constant 0 : index
    %238 = vector.load %arg6[%c5, %c0_91] : memref<9x32xf32, #tpu.memory_space<vmem>>, vector<1x32xf32>
    %c8 = arith.constant 8 : index
    %c0_92 = arith.constant 0 : index
    %239 = vector.load %arg6[%c8, %c0_92] : memref<9x32xf32, #tpu.memory_space<vmem>>, vector<1x32xf32>
    %cst_93 = arith.constant dense<0.000000e+00> : vector<16xf32>
    %240 = vector.multi_reduction <add>, %237, %cst_93 [1] : vector<16x32xf32> to vector<16xf32>
    %241 = vector.shape_cast %240 : vector<16xf32> to vector<16x1xf32>
    %cst_94 = arith.constant 3.200000e+01 : f32
    %242 = vector.broadcast %cst_94 : f32 to vector<16x1xf32>
    %243 = arith.divf %241, %242 : vector<16x1xf32>
    %244 = vector.broadcast %243 : vector<16x1xf32> to vector<16x32xf32>
    %245 = arith.subf %237, %244 : vector<16x32xf32>
    %246 = arith.mulf %245, %245 : vector<16x32xf32>
    %cst_95 = arith.constant dense<0.000000e+00> : vector<16xf32>
    %247 = vector.multi_reduction <add>, %246, %cst_95 [1] : vector<16x32xf32> to vector<16xf32>
    %248 = vector.shape_cast %247 : vector<16xf32> to vector<16x1xf32>
    %cst_96 = arith.constant 3.200000e+01 : f32
    %249 = vector.broadcast %cst_96 : f32 to vector<16x1xf32>
    %250 = arith.divf %248, %249 : vector<16x1xf32>
    %251 = vector.broadcast %243 : vector<16x1xf32> to vector<16x32xf32>
    %252 = arith.subf %237, %251 : vector<16x32xf32>
    %cst_97 = arith.constant 9.99999974E-6 : f32
    %253 = vector.broadcast %cst_97 : f32 to vector<16x1xf32>
    %254 = arith.addf %250, %253 : vector<16x1xf32>
    %255 = math.rsqrt %254 : vector<16x1xf32>
    %256 = vector.broadcast %255 : vector<16x1xf32> to vector<16x32xf32>
    %257 = arith.mulf %252, %256 : vector<16x32xf32>
    %258 = vector.broadcast %238 : vector<1x32xf32> to vector<16x32xf32>
    %259 = arith.mulf %257, %258 : vector<16x32xf32>
    %260 = vector.broadcast %239 : vector<1x32xf32> to vector<16x32xf32>
    %261 = arith.addf %259, %260 : vector<16x32xf32>
    %c0_98 = arith.constant 0 : index
    %c0_99 = arith.constant 0 : index
    %262 = vector.load %arg7[%c0_98, %c0_99] : memref<16x32xf32, #tpu.memory_space<vmem>>, vector<16x32xf32>
    tpu.vector_store %arg7[%c0_98, %c0_99], %261 {strides = array<i32>} : memref<16x32xf32, #tpu.memory_space<vmem>>, vector<16x32xf32>,
    return
  }
  func.func @transform_0(%arg0: i32) -> (i32, i32, i32) {
    %c0_i32 = arith.constant 0 : i32
    %c0_i32_0 = arith.constant 0 : i32
    %c0_i32_1 = arith.constant 0 : i32
    %c0_i32_2 = arith.constant 0 : i32
    return %c0_i32, %c0_i32_0, %c0_i32_1 : i32, i32, i32
  }
  func.func @transform_1(%arg0: i32) -> (i32, i32, i32) {
    %c0_i32 = arith.constant 0 : i32
    %c0_i32_0 = arith.constant 0 : i32
    %c0_i32_1 = arith.constant 0 : i32
    %c0_i32_2 = arith.constant 0 : i32
    return %c0_i32, %c0_i32_0, %c0_i32_1 : i32, i32, i32
  }
  func.func @transform_2(%arg0: i32) -> (i32, i32) {
    %c0_i32 = arith.constant 0 : i32
    %c0_i32_0 = arith.constant 0 : i32
    %c0_i32_1 = arith.constant 0 : i32
    return %c0_i32, %c0_i32_0 : i32, i32
  }
  func.func @transform_3(%arg0: i32) -> (i32, i32) {
    %c0_i32 = arith.constant 0 : i32
    %c0_i32_0 = arith.constant 0 : i32
    %c0_i32_1 = arith.constant 0 : i32
    return %c0_i32, %c0_i32_0 : i32, i32
  }
  func.func @transform_4(%arg0: i32) -> (i32, i32) {
    %c0_i32 = arith.constant 0 : i32
    %c0_i32_0 = arith.constant 0 : i32
    %c0_i32_1 = arith.constant 0 : i32
    return %c0_i32, %c0_i32_0 : i32, i32
  }
  func.func @transform_5(%arg0: i32) -> (i32, i32) {
    %c0_i32 = arith.constant 0 : i32
    %c0_i32_0 = arith.constant 0 : i32
    %c0_i32_1 = arith.constant 0 : i32
    return %c0_i32, %c0_i32_0 : i32, i32
  }
  func.func @transform_6(%arg0: i32) -> (i32, i32) {
    %c0_i32 = arith.constant 0 : i32
    %c0_i32_0 = arith.constant 0 : i32
    %c0_i32_1 = arith.constant 0 : i32
    return %c0_i32, %c0_i32_0 : i32, i32
  }
}

</mosaic_0001>

<bundles_post_ra>
// kernel: decoder_layer.1
= control target key start
LH: loop header
LB: loop body
LE: loop exit
PB: predicated region body
PF: predicated region fallthrough
CT: control target
= control target key end

     0   :  { %vm48_vm0 = vcmask 261120   ;;  %s4225_s0 = inlined_call_operand.vmem [shape: f32[2,16,32], index: 0, kind: input, shape index: {}]   ;;  %s4226_s1 = inlined_call_operand.vmem [shape: f32[2,16,16], index: 1, kind: input, shape index: {}]   ;;  %s4227_s2 = inlined_call_operand.vmem [shape: f32[32,256], index: 2, kind: input, shape index: {}]   ;;  %s4228_s3 = inlined_call_operand.vmem [shape: f32[1,256], index: 3, kind: input, shape index: {}]   ;;  %s4229_s4 = inlined_call_operand.vmem [shape: f32[128,32], index: 4, kind: input, shape index: {}]   ;;  %s4230_s5 = inlined_call_operand.vmem [shape: f32[9,32], index: 5, kind: input, shape index: {}]   ;;  %s4231_s6 = inlined_call_operand.hbm [shape: f32[16,32], index: 6, kind: output, shape index: {}]  }
   0x1   :  { %v3786_v0 = vld [vmem:[%s4227_s2] sm:$0xff]  ;;  %v3791_v1 = vld [vmem:[%s4227_s2 + $0x10] sm:$0xff] }
   0x2   :  { %v3796_v2 = vld [vmem:[%s4227_s2 + $0x20] sm:$0xff]  ;;  %v3383_v3 = vpack.c.bf16 %v3791_v1, %v3786_v0  ;;  %v3803_v4 = vld [vmem:[%s4227_s2 + $0x30] sm:$0xff] }
   0x3   :  { %v3808_v5 = vld [vmem:[%s4225_s0] sm:$0xff]  ;;  %v3387_v6 = vpack.c.bf16 %v3803_v4, %v3796_v2 }
   0x4   :  { %3176 = vmatprep.mubr.msk.f32.mxu1 %vm48_vm0, %v3808_v5 }
   0x5   :  { %11 = vsyncpa [#allocation3], 0  ;;  %3384 = vmatprep.subr.bf16.mxu1 %v3383_v3  ;;  %v3817_v7 = vld [vmem:[%s4225_s0 + $0x8] sm:$0xff]  ;;  %v3824_v8 = vld [vmem:[%s4228_s3] ss:$0 sm:$0xff]  ;;  %vm140_vm1 = vcmask 64512  }
   0x6   :  { %3386 = vmatpush3.bf16.msra.mxu1 %v3383_v3  ;;  %s3733_s11 = smov 120   ;;  %s3734_s12 = smov 96   ;;  %vm3854_vm2 = vmpackc.low %vm140_vm1, %vm140_vm1  ;;  %v3879_v31 = vld [vmem:[%s4226_s1 + $0x8] sm:$0xff]  ;;  %v3884_v32 = vld [vmem:[%s4226_s1] sm:$0xff]  ;;  %vm224_vm3 = vcmask 130048   ;;  %vm2813_vm4 = vcmask 523264  }
   0x7   :  { %3388 = vmatprep.subr.bf16.mxu1 %v3387_v6  ;;  %s3735_s13 = smov 88   ;;  %s3736_s14 = smov 112  }
   0x8   :  { %s3737_s15 = smov 80   ;;  %s3738_s20 = smov 56  }
   0x9   :  { %s3739_s21 = smov 72   ;;  %s3740_s22 = smov 64  }
   0xa   :  { %3390 = vmatpush3.bf16.msra.mxu1 %v3387_v6  ;;  %s3741_s23 = smov 104   ;;  %s3742_s24 = smov 48  }
   0xb   :  { %s3743_s25 = smov 40   ;;  %s3744_s17 = smov 32  }
   0xd   :  { %3177 = vmatmul.mubr.msk.f32.vlgmr.msra.gmra.mrb[0].mxu1 %vm48_vm0, %v3817_v7 }
  0xe0   :  { %v3178_v9 = vpop.f32.mrb[0].mxu1 }
  0xe1   :  { %v3827_v10 = vadd.f32 %v3178_v9, %v3824_v8  ;;  %v121_v11 = vpop.f32.mrb[1].mxu1 }
  0xe2   :  { %v3830_v12 = vadd.f32 %v3824_v8, %v121_v11 }
  0xe4   :  { %334 = vrot.lane.b32.xlu1 %v3830_v12, %s3733_s11  ;;  %3183 = vmatprep.mubr.msk.f32.mxu1 %vm140_vm1, %v3830_v12  ;;  %v3838_v13 = vpack.i.bf16 %v3827_v10, %v3830_v12 }
  0xe6   :  { %3539 = vrot.lane.b32.xlu0 %v3838_v13, %s3734_s12 }
  0xe8   :  { %336 = vrot.lane.b32.xlu1 %v3827_v10, %s3733_s11 }
  0xea   :  { %3544 = vrot.lane.b32.xlu0 %v3838_v13, %s3735_s13 }
  0xec   :  { %696 = vrot.lane.b32.xlu1 %v3830_v12, %s3736_s14 }
  0xee   :  { %3549 = vrot.lane.b32.xlu0 %v3838_v13, %s3737_s15 }
  0xf2   :  { %698 = vrot.lane.b32.xlu0 %v3827_v10, %s3736_s14 }
 0x156   :  { %v335_v24 = vpop.permute.xlu1 %334 }
 0x158   :  { %v3540_v14 = vpop.permute.xlu0 %3539 }
 0x159   :  { %v3542_v15 = vunpack.i.h.bf16 %v3540_v14  ;;  %v3541_v16 = vunpack.i.l.bf16 %v3540_v14 }
 0x15a   :  { %v337_v28 = vpop.permute.xlu1 %336 }
 0x15b   :  { %v3391_v18 = vpack.c.bf16 %v3542_v15, %v3541_v16 }
 0x15c   :  { %v3545_v19 = vpop.permute.xlu0 %3544 }
 0x15d   :  { %v3547_v20 = vunpack.i.h.bf16 %v3545_v19  ;;  %v3546_v21 = vunpack.i.l.bf16 %v3545_v19  ;;  %3393 = vmatprep.subr.msk.bf16.mxu1 %vm3854_vm2, %v3391_v18 }
 0x15e   :  { %3396 = vmatpush3.bf16.xpose.msk.msra.mxu1 %vm3854_vm2, %v3391_v18  ;;  %v697_v29 = vpop.permute.xlu1 %696 }
 0x15f   :  { %v3401_v22 = vpack.c.bf16 %v3547_v20, %v3546_v21 }
 0x160   :  { %v3550_v23 = vpop.permute.xlu0 %3549 }
 0x161   :  { %v3552_v25 = vunpack.i.h.bf16 %v3550_v23  ;;  %v3551_v26 = vunpack.i.l.bf16 %v3550_v23  ;;  %3403 = vmatprep.subr.msk.bf16.mxu1 %vm3854_vm2, %v3401_v22 }
 0x163   :  { %v3411_v27 = vpack.c.bf16 %v3552_v25, %v3551_v26 }
 0x164   :  { %v699_v30 = vpop.permute.xlu0 %698 }
 0x165   :  { %3184 = vmatmul.mubr.msk.f32.vlgmr.msra.gmra.mrb[2].mxu1 %vm140_vm1, %v3827_v10 }
 0x166   :  { %3406 = vmatpush3.bf16.xpose.msk.msra.mxu1 %vm3854_vm2, %v3401_v22  ;;  %3197 = vmatprep.mubr.msk.f32.mxu1 %vm140_vm1, %v335_v24 }
 0x167   :  { %3413 = vmatprep.subr.msk.bf16.mxu1 %vm3854_vm2, %v3411_v27 }
 0x16d   :  { %3198 = vmatmul.mubr.msk.f32.vlgmr.msra.gmra.mrb[4].mxu1 %vm140_vm1, %v337_v28 }
 0x16e   :  { %3416 = vmatpush3.bf16.xpose.msk.msra.mxu1 %vm3854_vm2, %v3411_v27  ;;  %3221 = vmatprep.mubr.msk.f32.mxu1 %vm140_vm1, %v697_v29 }
 0x175   :  { %3222 = vmatmul.mubr.msk.f32.vlgmr.msra.gmra.mrb[6].mxu1 %vm140_vm1, %v699_v30 }
 0x238   :  { %v3185_v33 = vpop.f32.mrb[2].mxu1 }
 0x239   :  { %v221_v34 = vadd.f32 %v3185_v33, %v3879_v31  ;;  %v215_v35 = vpop.f32.mrb[3].mxu1 }
 0x23a   :  { %v216_v36 = vadd.f32 %v215_v35, %v3884_v32 }
 0x23b   :  { %v228_v37 = vsel %vm224_vm3, %v221_v34, -inf }
 0x23c   :  { %229 = vmax.xlane.f32.xlu0 %v228_v37  ;;  %v225_v38 = vsel %vm224_vm3, %v216_v36, -inf }
 0x23d   :  { %226 = vmax.xlane.f32.xlu1 %v225_v38 }
 0x240   :  { %v3199_v39 = vpop.f32.mrb[4].mxu1 }
 0x241   :  { %v422_v40 = vadd.f32 %v3199_v39, %v3879_v31  ;;  %v416_v41 = vpop.f32.mrb[5].mxu1 }
 0x242   :  { %v417_v42 = vadd.f32 %v416_v41, %v3884_v32 }
 0x243   :  { %v428_v43 = vsel %vm224_vm3, %v422_v40, -inf }
 0x244   :  { %429 = vmax.xlane.f32.xlu1 %v428_v43  ;;  %v425_v44 = vsel %vm224_vm3, %v417_v42, -inf }
 0x245   :  { %426 = vmax.xlane.f32.xlu0 %v425_v44 }
 0x248   :  { %v3223_v45 = vpop.f32.mrb[6].mxu1 }
 0x249   :  { %v778_v46 = vpop.f32.mrb[7].mxu1  ;;  %v784_v14 = vadd.f32 %v3223_v45, %v3879_v31 }
 0x24a   :  { %v779_v11 = vadd.f32 %v778_v46, %v3884_v32 }
 0x24b   :  { %v790_v16 = vsel %vm224_vm3, %v784_v14, -inf }
 0x24c   :  { %v787_v15 = vsel %vm224_vm3, %v779_v11, -inf }
 0x2c9   :  { %v230_v47 = vpop.xlane.xlu0 %229 }
 0x2ca   :  { %v232_v48 = vsub.f32 %v221_v34, %v230_v47  ;;  %v227_v49 = vpop.xlane.xlu1 %226 }
 0x2cb   :  { %v231_v50 = vsub.f32 %v216_v36, %v227_v49 }
 0x2cc   :  { %v235_v51 = vmul.f32 1.442695, %v232_v48 }
 0x2cd   :  { %v233_v52 = vmul.f32 1.442695, %v231_v50 }
 0x2ce   :  { %3633 = vpow2.f32 %v235_v51 }
 0x2cf   :  { %3635 = vpow2.f32 %v233_v52 }
 0x2d1   :  { %v430_v53 = vpop.xlane.xlu1 %429 }
 0x2d2   :  { %v432_v54 = vsub.f32 %v422_v40, %v430_v53  ;;  %v427_v55 = vpop.xlane.xlu0 %426  ;;  %v131_v53 = vld [vmem:[%s4229_s4 + $0x8] sm:$0xff] }
 0x2d3   :  { %v431_v56 = vsub.f32 %v417_v42, %v427_v55 }
 0x2d4   :  { %v435_v57 = vmul.f32 1.442695, %v432_v54  ;;  %v130_v54 = vld [vmem:[%s4229_s4] sm:$0xff] }
 0x2d5   :  { %v433_v58 = vmul.f32 1.442695, %v431_v56 }
 0x2d6   :  { %3637 = vpow2.f32 %v435_v57 }
 0x2d7   :  { %3639 = vpow2.f32 %v433_v58 }
 0x2d8   :  { %v3634_v59 = vpop.eup %3633 }
 0x2d9   :  { %v3636_v60 = vpop.eup %3635  ;;  %v240_v61 = vsel %vm224_vm3, %v3634_v59, 0.0 }
 0x2da   :  { %241 = vadd.xlane.f32.xlu1 %v240_v61  ;;  %v237_v62 = vsel %vm224_vm3, %v3636_v60, 0.0 }
 0x2db   :  { %238 = vadd.xlane.f32.xlu0 %v237_v62 }
 0x2e0   :  { %v3896_v63 = vpop.eup %3637 }
 0x2e1   :  { %v3640_v3 = vpop.eup %3639  ;;  %v440_v6 = vsel %vm224_vm3, %v3896_v63, 0.0 }
 0x2e2   :  { %441 = vadd.xlane.f32.xlu1 %v440_v6  ;;  %v437_v9 = vsel %vm224_vm3, %v3640_v3, 0.0 }
 0x2e3   :  { %438 = vadd.xlane.f32.xlu0 %v437_v9 }
 0x2f3   :  { %3559 = vrot.lane.b32.xlu1 %v3838_v13, %s3738_s20 }
 0x2f7   :  { %3564 = vrot.lane.b32.xlu1 %v3838_v13, %s3739_s21 }
 0x2f9   :  { %3554 = vrot.lane.b32.xlu0 %v3838_v13, %s3740_s22 }
 0x2fb   :  { %981 = vrot.lane.b32.xlu1 %v3827_v10, %s3741_s23 }
 0x2fd   :  { %979 = vrot.lane.b32.xlu0 %v3830_v12, %s3741_s23 }
 0x31c   :  { %788 = vmax.xlane.f32.xlu0 %v787_v15 }
 0x31f   :  { %791 = vmax.xlane.f32.xlu1 %v790_v16 }
 0x330   :  { %3569 = vrot.lane.b32.xlu1 %v3838_v13, %s3742_s24  ;;  %s3745_s24 = smov [#allocation2]  }
 0x334   :  { %3574 = vrot.lane.b32.xlu1 %v3838_v13, %s3743_s25 }
 0x367   :  { %v242_v18 = vpop.xlane.xlu1 %241 }
 0x368   :  { %v239_v10 = vpop.xlane.xlu0 %238 }
 0x369   :  { %3641 = vrcp.f32 %v239_v10 }
 0x36a   :  { %3643 = vrcp.f32 %v242_v18 }
 0x36f   :  { %v442_v12 = vpop.xlane.xlu1 %441 }
 0x370   :  { %v439_v19 = vpop.xlane.xlu0 %438 }
 0x371   :  { %3645 = vrcp.f32 %v439_v19 }
 0x372   :  { %3647 = vrcp.f32 %v442_v12  ;;  %v132_v12 = vld [vmem:[%s4229_s4 + $0x10] sm:$0xff] }
 0x373   :  { %v3642_v20 = vpop.eup %3641  ;;  %v3560_v21 = vpop.permute.xlu1 %3559 }
 0x374   :  { %v3555_v22 = vpop.permute.xlu0 %3554  ;;  %v244_v23 = vmul.f32 %v3642_v20, %v3636_v60  ;;  %v3562_v24 = vunpack.i.h.bf16 %v3560_v21  ;;  %v3561_v25 = vunpack.i.l.bf16 %v3560_v21  ;;  %v3644_v29 = vpop.eup %3643 }
 0x375   :  { %v3557_v26 = vunpack.i.h.bf16 %v3555_v22  ;;  %v3556_v27 = vunpack.i.l.bf16 %v3555_v22  ;;  %v246_v38 = vmul.f32 %v3644_v29, %v3634_v59 }
 0x376   :  { %3190 = vmatprep.mubr.msk.f32.mxu0 %vm224_vm3, %v244_v23  ;;  %v3407_v35 = vpack.c.bf16 %v3562_v24, %v3561_v25 }
 0x377   :  { %v3565_v28 = vpop.permute.xlu1 %3564  ;;  %v3397_v13 = vpack.c.bf16 %v3557_v26, %v3556_v27 }
 0x378   :  { %v3567_v30 = vunpack.i.h.bf16 %v3565_v28  ;;  %v3566_v33 = vunpack.i.l.bf16 %v3565_v28  ;;  %v980_v34 = vpop.permute.xlu0 %979 }
 0x379   :  { %3398 = vmatprep.subr.bf16.mxu0 %v3397_v13  ;;  %3240 = vmatprep.mubr.msk.f32.mxu1 %vm140_vm1, %v980_v34 }
 0x37a   :  { %v3421_v36 = vpack.c.bf16 %v3567_v30, %v3566_v33  ;;  %3400 = vmatpush3.bf16.msra.mxu0 %v3397_v13 }
 0x37b   :  { %v3646_v37 = vpop.eup %3645  ;;  %3408 = vmatprep.subr.bf16.mxu0 %v3407_v35  ;;  %v982_v42 = vpop.permute.xlu1 %981 }
 0x37c   :  { %v3648_v39 = vpop.eup %3647  ;;  %3423 = vmatprep.subr.msk.bf16.mxu1 %vm3854_vm2, %v3421_v36  ;;  %v444_v40 = vmul.f32 %v3646_v37, %v3640_v3 }
 0x37d   :  { %3191 = vmatmul.mubr.msk.f32.vlgmr.msra.gmra.mrb[0].mxu0 %vm224_vm3, %v246_v38  ;;  %3426 = vmatpush3.bf16.xpose.msk.msra.mxu1 %vm3854_vm2, %v3421_v36  ;;  %v446_v41 = vmul.f32 %v3648_v39, %v3896_v63  ;;  %v133_v36 = vld [vmem:[%s4229_s4 + $0x18] sm:$0xff] }
 0x37e   :  { %3410 = vmatpush3.bf16.msra.mxu0 %v3407_v35  ;;  %3204 = vmatprep.mubr.msk.f32.mxu0 %vm224_vm3, %v444_v40 }
 0x37f   :  { %3207 = vmatprep.subr.mxu0 %v131_v53 }
 0x381   :  { %3205 = vmatmul.mubr.msk.f32.vlgmr.msra.gmra.mrb[2].mxu0 %vm224_vm3, %v446_v41 }
 0x382   :  { %3208 = vmatpush3.msra.mxu0 %v131_v53 }
 0x383   :  { %3212 = vmatprep.subr.mxu0 %v130_v54 }
 0x384   :  { %3241 = vmatmul.mubr.msk.f32.vlgmr.msra.gmra.mrb[8].mxu1 %vm140_vm1, %v982_v42 }
 0x3a9   :  { %v789_v43 = vpop.xlane.xlu0 %788 }
 0x3aa   :  { %v793_v44 = vsub.f32 %v779_v11, %v789_v43 }
 0x3ac   :  { %v795_v45 = vmul.f32 1.442695, %v793_v44  ;;  %v792_v46 = vpop.xlane.xlu1 %791 }
 0x3ad   :  { %v794_v47 = vsub.f32 %v784_v14, %v792_v46 }
 0x3ae   :  { %3649 = vpow2.f32 %v795_v45  ;;  %v2994_v45 = vld [vmem:[%s4230_s5] ss:$0 sm:$0xff] }
 0x3af   :  { %v797_v48 = vmul.f32 1.442695, %v794_v47 }
 0x3b0   :  { %v3570_v56 = vpop.permute.xlu1 %3569 }
 0x3b1   :  { %3651 = vpow2.f32 %v797_v48  ;;  %v3572_v60 = vunpack.i.h.bf16 %v3570_v56  ;;  %v3571_v61 = vunpack.i.l.bf16 %v3570_v56 }
 0x3b3   :  { %v3417_v3 = vpack.c.bf16 %v3572_v60, %v3571_v61 }
 0x3b4   :  { %v3575_v10 = vpop.permute.xlu1 %3574 }
 0x3b5   :  { %v3577_v19 = vunpack.i.h.bf16 %v3575_v10  ;;  %v3576_v20 = vunpack.i.l.bf16 %v3575_v10 }
 0x3b8   :  { %v3650_v49 = vpop.eup %3649 }
 0x3b9   :  { %v799_v50 = vsel %vm224_vm3, %v3650_v49, 0.0 }
 0x3ba   :  { %800 = vadd.xlane.f32.xlu0 %v799_v50 }
 0x3bb   :  { %v3652_v51 = vpop.eup %3651 }
 0x3bc   :  { %v802_v52 = vsel %vm224_vm3, %v3652_v51, 0.0 }
 0x3be   :  { %803 = vadd.xlane.f32.xlu0 %v802_v52 }
 0x447   :  { %v801_v55 = vpop.xlane.xlu0 %800 }
 0x448   :  { %3653 = vrcp.f32 %v801_v55 }
 0x44b   :  { %v804_v58 = vpop.xlane.xlu0 %803 }
 0x44c   :  { %3655 = vrcp.f32 %v804_v58 }
 0x450   :  { %v3192_v57 = vpop.f32.mrb[0].mxu0 }
 0x451   :  { %v325_v59 = vpop.f32.mrb[1].mxu0 }
 0x452   :  { %v3654_v16 = vpop.eup %3653 }
 0x453   :  { %v806_v22 = vmul.f32 %v3654_v16, %v3650_v49  ;;  %v3993_v16 = vld [vmem:[%s4227_s2 + $0x38] sm:$0xff] }
 0x454   :  { %v3206_v62 = vpop.f32.mrb[2].mxu0 }
 0x455   :  { %v525_v63 = vpop.f32.mrb[3].mxu0 }
 0x456   :  { %3209 = vmatprep.mubr.msk.f32.mxu0 %vm140_vm1, %v525_v63  ;;  %v3656_v18 = vpop.eup %3655 }
 0x457   :  { %3210 = vmatmul.mubr.msk.f32.vlgmr.msra.gmra.mrb[4].mxu0 %vm140_vm1, %v3206_v62  ;;  %v3242_v6 = vpop.f32.mrb[8].mxu1 }
 0x458   :  { %3213 = vmatpush3.msra.mxu0 %v130_v54  ;;  %3214 = vmatprep.mubr.msk.f32.mxu0 %vm140_vm1, %v325_v59  ;;  %v1061_v9 = vpop.f32.mrb[9].mxu1  ;;  %v1067_v14 = vadd.f32 %v3242_v6, %v3879_v31  ;;  %v808_v31 = vmul.f32 %v3656_v18, %v3652_v51  ;;  %v3578_v54 = vpack.i.bf16 %v3791_v1, %v3786_v0  ;;  %v3974_v1 = vld [vmem:[%s4227_s2 + $0x8] sm:$0xff] }
 0x459   :  { %3418 = vmatprep.subr.bf16.mxu0 %v3417_v3  ;;  %v1062_v11 = vadd.f32 %v1061_v9, %v3884_v32  ;;  %v3427_v32 = vpack.c.bf16 %v3577_v19, %v3576_v20  ;;  %v3979_v9 = vld [vmem:[%s4227_s2 + $0x18] sm:$0xff] }
 0x45a   :  { %v1073_v21 = vsel %vm224_vm3, %v1067_v14, -inf }
 0x45b   :  { %v1070_v15 = vsel %vm224_vm3, %v1062_v11, -inf }
 0x45c   :  { %1071 = vmax.xlane.f32.xlu0 %v1070_v15  ;;  %v3988_v15 = vld [vmem:[%s4227_s2 + $0x28] sm:$0xff] }
 0x45d   :  { %v3443_v10 = vpack.c.bf16 %v3993_v16, %v3988_v15 }
 0x45f   :  { %3215 = vmatmul.mubr.msk.f32.vlgmr.msra.gmra.mrb[4].mxu0 %vm140_vm1, %v3192_v57 }
 0x460   :  { %3420 = vmatpush3.bf16.msra.mxu0 %v3417_v3  ;;  %1074 = vmax.xlane.f32.xlu0 %v1073_v21 }
 0x461   :  { %3228 = vmatprep.mubr.msk.f32.mxu0 %vm224_vm3, %v806_v22  ;;  %3231 = vmatprep.subr.mxu0 %v132_v12 }
 0x463   :  { %3229 = vmatmul.mubr.msk.f32.vlgmr.msra.gmra.mrb[6].mxu0 %vm224_vm3, %v808_v31 }
 0x464   :  { %3232 = vmatpush3.msra.mxu0 %v132_v12 }
 0x465   :  { %3428 = vmatprep.subr.bf16.mxu0 %v3427_v32 }
 0x4e9   :  { %v1072_v23 = vpop.xlane.xlu0 %1071 }
 0x4ea   :  { %v1076_v24 = vsub.f32 %v1062_v11, %v1072_v23  ;;  %v3439_v11 = vpack.c.bf16 %v3979_v9, %v3974_v1 }
 0x4ec   :  { %v1078_v25 = vmul.f32 1.442695, %v1076_v24 }
 0x4ed   :  { %v1075_v26 = vpop.xlane.xlu0 %1074 }
 0x4ee   :  { %3657 = vpow2.f32 %v1078_v25  ;;  %v1077_v27 = vsub.f32 %v1067_v14, %v1075_v26  ;;  %v3583_v14 = vpack.i.bf16 %v3803_v4, %v3796_v2  ;;  %v2955_v2 = vld [vmem:[%s4225_s0 + $0x10] sm:$0xff]  ;;  %v2956_v4 = vld [vmem:[%s4225_s0 + $0x18] sm:$0xff] }
 0x4f0   :  { %v1080_v28 = vmul.f32 1.442695, %v1077_v27 }
 0x4f2   :  { %3659 = vpow2.f32 %v1080_v28 }
 0x4f8   :  { %v3658_v13 = vpop.eup %3657 }
 0x4f9   :  { %v1082_v29 = vsel %vm224_vm3, %v3658_v13, 0.0 }
 0x4fa   :  { %1083 = vadd.xlane.f32.xlu0 %v1082_v29  ;;  %v2996_v29 = vld [vmem:[%s4230_s5 + $0x6] ss:$0 sm:$0xff] }
 0x4fc   :  { %v3660_v30 = vpop.eup %3659 }
 0x4fd   :  { %v1085_v33 = vsel %vm224_vm3, %v3660_v30, 0.0 }
 0x4fe   :  { %1086 = vadd.xlane.f32.xlu0 %v1085_v33 }
 0x536   :  { %v3230_v34 = vpop.f32.mrb[6].mxu0 }
 0x537   :  { %v887_v35 = vpop.f32.mrb[7].mxu0 }
 0x538   :  { %3233 = vmatprep.mubr.msk.f32.mxu0 %vm140_vm1, %v887_v35  ;;  %v4025_v35 = vld [vmem:[%s4228_s3 + $0x1] ss:$0 sm:$0xff] }
 0x539   :  { %3234 = vmatmul.mubr.msk.f32.vlgmr.msra.gmra.mrb[4].mxu0 %vm140_vm1, %v3230_v34 }
 0x53a   :  { %3430 = vmatpush3.bf16.msra.mxu0 %v3427_v32 }
 0x53b   :  { %3250 = vmatprep.subr.mxu0 %v133_v36 }
 0x587   :  { %v1084_v37 = vpop.xlane.xlu0 %1083 }
 0x588   :  { %3661 = vrcp.f32 %v1084_v37 }
 0x58b   :  { %v1087_v38 = vpop.xlane.xlu0 %1086 }
 0x58c   :  { %3663 = vrcp.f32 %v1087_v38 }
 0x592   :  { %v3662_v39 = vpop.eup %3661 }
 0x593   :  { %v1089_v40 = vmul.f32 %v3662_v39, %v3658_v13 }
 0x595   :  { %3247 = vmatprep.mubr.msk.f32.mxu0 %vm224_vm3, %v1089_v40 }
 0x596   :  { %v3664_v41 = vpop.eup %3663 }
 0x597   :  { %v1091_v42 = vmul.f32 %v3664_v41, %v3660_v30 }
 0x599   :  { %3248 = vmatmul.mubr.msk.f32.vlgmr.msra.gmra.mrb[8].mxu0 %vm224_vm3, %v1091_v42 }
 0x59a   :  { %3251 = vmatpush3.msra.mxu0 %v133_v36 }
 0x59b   :  { %3440 = vmatprep.subr.bf16.mxu0 %v3439_v11 }
 0x66c   :  { %v3249_v43 = vpop.f32.mrb[8].mxu0 }
 0x66d   :  { %v1170_v44 = vpop.f32.mrb[9].mxu0 }
 0x66e   :  { %3252 = vmatprep.mubr.msk.f32.mxu0 %vm140_vm1, %v1170_v44 }
 0x66f   :  { %3253 = vmatmul.mubr.msk.f32.vlgmr.msra.gmra.mrb[4].mxu0 %vm140_vm1, %v3249_v43 }
 0x670   :  { %3442 = vmatpush3.bf16.msra.mxu0 %v3439_v11  ;;  %3274 = vmatprep.mubr.msk.f32.mxu0 %vm48_vm0, %v2955_v2 }
 0x671   :  { %3444 = vmatprep.subr.bf16.mxu0 %v3443_v10 }
 0x674   :  { %3446 = vmatpush3.bf16.msra.mxu0 %v3443_v10 }
 0x677   :  { %3275 = vmatmul.mubr.msk.f32.vlgmr.msra.gmra.mrb[10].mxu0 %vm48_vm0, %v2956_v4 }
 0x742   :  { %v3254_v46 = vpop.f32.mrb[4].mxu0 }
 0x743   :  { %v1267_v47 = vadd.f32 %v3254_v46, %v2994_v45  ;;  %v1251_v48 = vpop.f32.mrb[5].mxu0 }
 0x744   :  { %v1266_v49 = vadd.f32 %v2994_v45, %v1251_v48 }
 0x745   :  { %v1269_v50 = vadd.f32 %v1267_v47, %v3817_v7 }
 0x746   :  { %v1268_v51 = vadd.f32 %v1266_v49, %v3808_v5 }
 0x747   :  { %v1275_v52 = vsel %vm48_vm0, %v1269_v50, 0.0 }
 0x748   :  { %1276 = vadd.xlane.f32.xlu1 %v1275_v52  ;;  %v1272_v53 = vsel %vm48_vm0, %v1268_v51, 0.0 }
 0x749   :  { %1273 = vadd.xlane.f32.xlu0 %v1272_v53 }
 0x74a   :  { %v3276_v36 = vpop.f32.mrb[10].mxu0 }
 0x74b   :  { %v1510_v37 = vadd.f32 %v3276_v36, %v4025_v35  ;;  %v1504_v38 = vpop.f32.mrb[11].mxu0 }
 0x74c   :  { %v1505_v39 = vadd.f32 %v4025_v35, %v1504_v38 }
 0x74e   :  { %v4029_v40 = vpack.i.bf16 %v1510_v37, %v1505_v39  ;;  %v3447_v41 = vpack.c.bf16 %v1510_v37, %v1505_v39 }
 0x759   :  { %3589 = vrot.lane.b32.xlu1 %v4029_v40, %s3733_s11 }
 0x75f   :  { %3579 = vrot.lane.b32.xlu0 %v3578_v54, %s3744_s17 }
 0x7d5   :  { %v1277_v55 = vpop.xlane.xlu1 %1276 }
 0x7d6   :  { %v1280_v56 = vmul.f32 0.03125, %v1277_v55  ;;  %v1274_v57 = vpop.xlane.xlu0 %1273 }
 0x7d7   :  { %v1279_v58 = vmul.f32 0.03125, %v1274_v57 }
 0x7d8   :  { %v1282_v59 = vsub.f32 %v1269_v50, %v1280_v56 }
 0x7d9   :  { %v1281_v7 = vsub.f32 %v1268_v51, %v1279_v58  ;;  %v3590_v42 = vpop.permute.xlu1 %3589 }
 0x7da   :  { %v1284_v60 = vmul.f32 %v1282_v59, %v1282_v59  ;;  %v3580_v5 = vpop.permute.xlu0 %3579  ;;  %v3592_v43 = vunpack.i.h.bf16 %v3590_v42  ;;  %v3591_v44 = vunpack.i.l.bf16 %v3590_v42 }
 0x7db   :  { %v3582_v61 = vunpack.i.h.bf16 %v3580_v5  ;;  %v3581_v62 = vunpack.i.l.bf16 %v3580_v5  ;;  %v1283_v3 = vmul.f32 %v1281_v7, %v1281_v7 }
 0x7dc   :  { %v1288_v63 = vsel %vm48_vm0, %v1284_v60, 0.0  ;;  %v3457_v45 = vpack.c.bf16 %v3592_v43, %v3591_v44 }
 0x7dd   :  { %1289 = vadd.xlane.f32.xlu0 %v1288_v63  ;;  %v3431_v6 = vpack.c.bf16 %v3582_v61, %v3581_v62  ;;  %v1285_v0 = vsel %vm48_vm0, %v1283_v3, 0.0 }
 0x7df   :  { %3432 = vmatprep.subr.bf16.mxu1 %v3431_v6 }
 0x7e0   :  { %3434 = vmatpush3.bf16.msra.mxu1 %v3431_v6 }
 0x7e1   :  { %1286 = vadd.xlane.f32.xlu0 %v1285_v0 }
 0x7f7   :  { %3584 = vrot.lane.b32.xlu0 %v3583_v14, %s3744_s17 }
 0x7fb   :  { %1337 = vrot.lane.b32.xlu0 %v3824_v8, %s3744_s17  ;;  %v2995_v8 = vld [vmem:[%s4230_s5 + $0x3] ss:$0 sm:$0xff] }
 0x86a   :  { %v1290_v18 = vpop.xlane.xlu0 %1289 }
 0x86b   :  { %v1292_v12 = vmul.f32 0.03125, %v1290_v18 }
 0x86d   :  { %v1294_v19 = vadd.f32 1e-05, %v1292_v12 }
 0x86e   :  { %v1287_v20 = vpop.xlane.xlu0 %1286 }
 0x86f   :  { %3665 = vrsqrt.f32 %v1294_v19  ;;  %v1291_v21 = vmul.f32 0.03125, %v1287_v20 }
 0x871   :  { %v1293_v22 = vadd.f32 1e-05, %v1291_v21 }
 0x872   :  { %v3585_v31 = vpop.permute.xlu0 %3584 }
 0x873   :  { %3667 = vrsqrt.f32 %v1293_v22  ;;  %v3587_v32 = vunpack.i.h.bf16 %v3585_v31  ;;  %v3586_v23 = vunpack.i.l.bf16 %v3585_v31 }
 0x875   :  { %v3435_v24 = vpack.c.bf16 %v3587_v32, %v3586_v23 }
 0x876   :  { %v1338_v46 = vpop.permute.xlu0 %1337 }
 0x877   :  { %3436 = vmatprep.subr.bf16.mxu1 %v3435_v24 }
 0x878   :  { %3438 = vmatpush3.bf16.msra.mxu1 %v3435_v24 }
 0x879   :  { %v3666_v25 = vpop.eup %3665  ;;  %3449 = vmatprep.subr.msk.bf16.mxu1 %vm3854_vm2, %v3447_v41 }
 0x87a   :  { %v1298_v26 = vmul.f32 %v3666_v25, %v1282_v59  ;;  %v4070_v59 = vld [vmem:[%s4226_s1 + $0x18] sm:$0xff] }
 0x87c   :  { %v1304_v13 = vmul.f32 %v2995_v8, %v1298_v26 }
 0x87d   :  { %v3668_v27 = vpop.eup %3667 }
 0x87e   :  { %v1297_v28 = vmul.f32 %v3668_v27, %v1281_v7  ;;  %v4016_v34 = vadd.f32 %v2996_v29, %v1304_v13  ;;  %v4075_v7 = vld [vmem:[%s4226_s1 + $0x10] sm:$0xff] }
 0x880   :  { %v1303_v30 = vmul.f32 %v2995_v8, %v1297_v28 }
 0x882   :  { %v4014_v33 = vadd.f32 %v2996_v29, %v1303_v30 }
 0x884   :  { %3263 = vmatprep.mubr.msk.f32.mxu1 %vm48_vm0, %v4014_v33 }
 0x885   :  { %3264 = vmatmul.mubr.msk.f32.vlgmr.msra.gmra.mrb[10].mxu1 %vm48_vm0, %v4016_v34 }
 0x886   :  { %3452 = vmatpush3.bf16.xpose.msk.msra.mxu1 %vm3854_vm2, %v3447_v41 }
 0x887   :  { %3459 = vmatprep.subr.msk.bf16.mxu1 %vm3854_vm2, %v3457_v45 }
 0x958   :  { %v3265_v47 = vpop.f32.mrb[10].mxu1 }
 0x959   :  { %v4039_v48 = vadd.f32 %v3265_v47, %v1338_v46  ;;  %v1412_v49 = vpop.f32.mrb[11].mxu1 }
 0x95a   :  { %v4041_v50 = vadd.f32 %v1412_v49, %v1338_v46 }
 0x95b   :  { %2077 = vrot.lane.b32.xlu1 %v4039_v48, %s3736_s14 }
 0x95c   :  { %1713 = vrot.lane.b32.xlu0 %v4041_v50, %s3733_s11  ;;  %3281 = vmatprep.mubr.msk.f32.mxu1 %vm140_vm1, %v4041_v50 }
 0x95d   :  { %3282 = vmatmul.mubr.msk.f32.vlgmr.msra.gmra.mrb[12].mxu1 %vm140_vm1, %v4039_v48 }
 0x95e   :  { %3462 = vmatpush3.bf16.xpose.msk.msra.mxu1 %vm3854_vm2, %v3457_v45 }
 0x960   :  { %1715 = vrot.lane.b32.xlu0 %v4039_v48, %s3733_s11 }
 0x964   :  { %3594 = vrot.lane.b32.xlu0 %v4029_v40, %s3736_s14 }
 0x968   :  { %2075 = vrot.lane.b32.xlu0 %v4041_v50, %s3736_s14 }
 0x9cd   :  { %v2078_v58 = vpop.permute.xlu1 %2077 }
 0x9ce   :  { %v1714_v51 = vpop.permute.xlu0 %1713 }
 0x9cf   :  { %3295 = vmatprep.mubr.msk.f32.mxu1 %vm140_vm1, %v1714_v51 }
 0x9d2   :  { %v1716_v52 = vpop.permute.xlu0 %1715 }
 0x9d3   :  { %3296 = vmatmul.mubr.msk.f32.vlgmr.msra.gmra.mrb[14].mxu1 %vm140_vm1, %v1716_v52 }
 0x9d6   :  { %v3595_v53 = vpop.permute.xlu0 %3594 }
 0x9d7   :  { %v3597_v54 = vunpack.i.h.bf16 %v3595_v53  ;;  %v3596_v55 = vunpack.i.l.bf16 %v3595_v53 }
 0x9d9   :  { %v3467_v56 = vpack.c.bf16 %v3597_v54, %v3596_v55 }
 0x9da   :  { %v2076_v57 = vpop.permute.xlu0 %2075 }
 0x9db   :  { %3469 = vmatprep.subr.msk.bf16.mxu1 %vm3854_vm2, %v3467_v56  ;;  %3319 = vmatprep.mubr.msk.f32.mxu1 %vm140_vm1, %v2076_v57 }
 0x9dc   :  { %3472 = vmatpush3.bf16.xpose.msk.msra.mxu1 %vm3854_vm2, %v3467_v56 }
 0x9e3   :  { %3320 = vmatmul.mubr.msk.f32.vlgmr.msra.gmra.mrb[16].mxu1 %vm140_vm1, %v2078_v58 }
 0xa30   :  { %v3283_v60 = vpop.f32.mrb[12].mxu1 }
 0xa31   :  { %v1601_v5 = vadd.f32 %v3283_v60, %v4070_v59  ;;  %v1595_v61 = vpop.f32.mrb[13].mxu1 }
 0xa32   :  { %v1596_v62 = vadd.f32 %v4075_v7, %v1595_v61 }
 0xa33   :  { %v1607_v63 = vsel %vm224_vm3, %v1601_v5, -inf }
 0xa34   :  { %1608 = vmax.xlane.f32.xlu1 %v1607_v63  ;;  %v1604_v3 = vsel %vm224_vm3, %v1596_v62, -inf }
 0xa35   :  { %1605 = vmax.xlane.f32.xlu0 %v1604_v3 }
 0xaa6   :  { %v3297_v6 = vpop.f32.mrb[14].mxu1 }
 0xaa7   :  { %v1795_v0 = vpop.f32.mrb[15].mxu1  ;;  %v1801_v14 = vadd.f32 %v3297_v6, %v4070_v59 }
 0xaa8   :  { %v1796_v11 = vadd.f32 %v4075_v7, %v1795_v0 }
 0xaa9   :  { %v1807_v2 = vsel %vm224_vm3, %v1801_v14, -inf }
 0xaaa   :  { %v1804_v10 = vsel %vm224_vm3, %v1796_v11, -inf }
 0xaab   :  { %1805 = vmax.xlane.f32.xlu0 %v1804_v10 }
 0xaaf   :  { %1808 = vmax.xlane.f32.xlu0 %v1807_v2 }
 0xab6   :  { %v3321_v4 = vpop.f32.mrb[16].mxu1 }
 0xab7   :  { %v2157_v18 = vpop.f32.mrb[17].mxu1  ;;  %v2163_v43 = vadd.f32 %v3321_v4, %v4070_v59 }
 0xab8   :  { %v2158_v44 = vadd.f32 %v4075_v7, %v2157_v18 }
 0xab9   :  { %v2169_v46 = vsel %vm224_vm3, %v2163_v43, -inf }
 0xaba   :  { %v2166_v45 = vsel %vm224_vm3, %v2158_v44, -inf }
 0xac1   :  { %v1609_v12 = vpop.xlane.xlu1 %1608 }
 0xac2   :  { %v1611_v19 = vsub.f32 %v1601_v5, %v1609_v12  ;;  %v1606_v20 = vpop.xlane.xlu0 %1605 }
 0xac3   :  { %v1610_v21 = vsub.f32 %v1596_v62, %v1606_v20 }
 0xac4   :  { %v1614_v22 = vmul.f32 1.442695, %v1611_v19 }
 0xac5   :  { %v1612_v31 = vmul.f32 1.442695, %v1610_v21 }
 0xac6   :  { %3669 = vpow2.f32 %v1614_v22 }
 0xac7   :  { %3671 = vpow2.f32 %v1612_v31 }
 0xad0   :  { %v3670_v32 = vpop.eup %3669 }
 0xad1   :  { %v3672_v23 = vpop.eup %3671  ;;  %v1619_v24 = vsel %vm224_vm3, %v3670_v32, 0.0 }
 0xad2   :  { %1620 = vadd.xlane.f32.xlu0 %v1619_v24  ;;  %v1616_v25 = vsel %vm224_vm3, %v3672_v23, 0.0 }
 0xad3   :  { %1617 = vadd.xlane.f32.xlu1 %v1616_v25 }
 0xb38   :  { %v1806_v26 = vpop.xlane.xlu0 %1805 }
 0xb39   :  { %v1810_v8 = vsub.f32 %v1796_v11, %v1806_v26 }
 0xb3b   :  { %v1812_v27 = vmul.f32 1.442695, %v1810_v8 }
 0xb3c   :  { %v1809_v28 = vpop.xlane.xlu0 %1808 }
 0xb3d   :  { %3673 = vpow2.f32 %v1812_v27  ;;  %v1811_v13 = vsub.f32 %v1801_v14, %v1809_v28 }
 0xb3f   :  { %v1814_v29 = vmul.f32 1.442695, %v1811_v13 }
 0xb41   :  { %3675 = vpow2.f32 %v1814_v29 }
 0xb47   :  { %v3674_v30 = vpop.eup %3673 }
 0xb48   :  { %v1816_v36 = vsel %vm224_vm3, %v3674_v30, 0.0 }
 0xb49   :  { %1817 = vadd.xlane.f32.xlu1 %v1816_v36 }
 0xb4b   :  { %v3676_v37 = vpop.eup %3675 }
 0xb4c   :  { %v1819_v38 = vsel %vm224_vm3, %v3676_v37, 0.0 }
 0xb4d   :  { %1820 = vadd.xlane.f32.xlu0 %v1819_v38 }
 0xb5a   :  { %3599 = vrot.lane.b32.xlu1 %v4029_v40, %s3734_s12 }
 0xb5e   :  { %3609 = vrot.lane.b32.xlu1 %v4029_v40, %s3741_s23 }
 0xb5f   :  { %v1621_v47 = vpop.xlane.xlu0 %1620 }
 0xb60   :  { %v1618_v39 = vpop.xlane.xlu1 %1617 }
 0xb61   :  { %3677 = vrcp.f32 %v1618_v39 }
 0xb62   :  { %2358 = vrot.lane.b32.xlu1 %v4041_v50, %s3741_s23  ;;  %3679 = vrcp.f32 %v1621_v47 }
 0xb63   :  { %3604 = vrot.lane.b32.xlu0 %v4029_v40, %s3735_s13 }
 0xb67   :  { %2360 = vrot.lane.b32.xlu0 %v4039_v48, %s3741_s23 }
 0xb6b   :  { %v3678_v41 = vpop.eup %3677 }
 0xb6c   :  { %v1623_v42 = vmul.f32 %v3678_v41, %v3672_v23  ;;  %v3680_v54 = vpop.eup %3679  ;;  %v1513_v23 = vld [vmem:[%s4229_s4 + $0x20] sm:$0xff] }
 0xb6d   :  { %v1625_v62 = vmul.f32 %v3680_v54, %v3670_v32  ;;  %v1514_v32 = vld [vmem:[%s4229_s4 + $0x28] sm:$0xff] }
 0xb6e   :  { %3288 = vmatprep.mubr.msk.f32.mxu0 %vm224_vm3, %v1623_v42 }
 0xb86   :  { %2167 = vmax.xlane.f32.xlu1 %v2166_v45  ;;  %2170 = vmax.xlane.f32.xlu0 %v2169_v46 }
 0xbd6   :  { %v1818_v49 = vpop.xlane.xlu1 %1817 }
 0xbd7   :  { %3681 = vrcp.f32 %v1818_v49 }
 0xbda   :  { %v3600_v50 = vpop.permute.xlu1 %3599  ;;  %v1821_v48 = vpop.xlane.xlu0 %1820 }
 0xbdb   :  { %v3602_v51 = vunpack.i.h.bf16 %v3600_v50  ;;  %v3601_v52 = vunpack.i.l.bf16 %v3600_v50  ;;  %3683 = vrcp.f32 %v1821_v48 }
 0xbdd   :  { %v3453_v53 = vpack.c.bf16 %v3602_v51, %v3601_v52 }
 0xbde   :  { %v3610_v55 = vpop.permute.xlu1 %3609  ;;  %v3605_v56 = vpop.permute.xlu0 %3604 }
 0xbdf   :  { %v3612_v57 = vunpack.i.h.bf16 %v3610_v55  ;;  %v3611_v58 = vunpack.i.l.bf16 %v3610_v55  ;;  %v3607_v60 = vunpack.i.h.bf16 %v3605_v56  ;;  %v3606_v5 = vunpack.i.l.bf16 %v3605_v56  ;;  %3454 = vmatprep.subr.bf16.mxu0 %v3453_v53 }
 0xbe0   :  { %3456 = vmatpush3.bf16.msra.mxu0 %v3453_v53 }
 0xbe1   :  { %v3682_v61 = vpop.eup %3681  ;;  %v3477_v63 = vpack.c.bf16 %v3612_v57, %v3611_v58  ;;  %v3463_v3 = vpack.c.bf16 %v3607_v60, %v3606_v5 }
 0xbe2   :  { %v2359_v6 = vpop.permute.xlu1 %2358  ;;  %v1823_v0 = vmul.f32 %v3682_v61, %v3674_v30  ;;  %v2361_v10 = vpop.permute.xlu0 %2360 }
 0xbe3   :  { %3289 = vmatmul.mubr.msk.f32.vlgmr.msra.gmra.mrb[12].mxu0 %vm224_vm3, %v1625_v62  ;;  %3464 = vmatprep.subr.bf16.mxu0 %v3463_v3 }
 0xbe4   :  { %3479 = vmatprep.subr.msk.bf16.mxu1 %vm3854_vm2, %v3477_v63  ;;  %3338 = vmatprep.mubr.msk.f32.mxu1 %vm140_vm1, %v2359_v6  ;;  %v1516_v6 = vld [vmem:[%s4229_s4 + $0x38] sm:$0xff] }
 0xbe5   :  { %v3684_v11 = vpop.eup %3683  ;;  %3466 = vmatpush3.bf16.msra.mxu0 %v3463_v3  ;;  %3302 = vmatprep.mubr.msk.f32.mxu0 %vm224_vm3, %v1823_v0 }
 0xbe6   :  { %v1825_v14 = vmul.f32 %v3684_v11, %v3676_v37  ;;  %3482 = vmatpush3.bf16.xpose.msk.msra.mxu1 %vm3854_vm2, %v3477_v63  ;;  %3305 = vmatprep.subr.mxu0 %v1514_v32 }
 0xbe8   :  { %3303 = vmatmul.mubr.msk.f32.vlgmr.msra.gmra.mrb[14].mxu0 %vm224_vm3, %v1825_v14 }
 0xbe9   :  { %3306 = vmatpush3.msra.mxu0 %v1514_v32  ;;  %v3628_v32 = vpack.i.bf16 %v3993_v16, %v3988_v15  ;;  %v2801_v15 = vld [vmem:[%s4229_s4 + $0x40] sm:$0xff]  ;;  %v2802_v16 = vld [vmem:[%s4229_s4 + $0x48] sm:$0xff] }
 0xbea   :  { %3310 = vmatprep.subr.mxu0 %v1513_v23 }
 0xbed   :  { %3339 = vmatmul.mubr.msk.f32.vlgmr.msra.gmra.mrb[18].mxu1 %vm140_vm1, %v2361_v10 }
 0xc13   :  { %v2168_v2 = vpop.xlane.xlu1 %2167  ;;  %v2171_v4 = vpop.xlane.xlu0 %2170 }
 0xc14   :  { %v2172_v18 = vsub.f32 %v2158_v44, %v2168_v2  ;;  %v2173_v12 = vsub.f32 %v2163_v43, %v2171_v4  ;;  %v3035_v4 = vld [vmem:[%s4230_s5 + $0x1] ss:$0 sm:$0xff] }
 0xc16   :  { %v2174_v19 = vmul.f32 1.442695, %v2172_v18  ;;  %v2176_v20 = vmul.f32 1.442695, %v2173_v12 }
 0xc18   :  { %3685 = vpow2.f32 %v2174_v19 }
 0xc19   :  { %3687 = vpow2.f32 %v2176_v20 }
 0xc22   :  { %v3686_v21 = vpop.eup %3685 }
 0xc23   :  { %v3688_v22 = vpop.eup %3687  ;;  %v2178_v31 = vsel %vm224_vm3, %v3686_v21, 0.0 }
 0xc24   :  { %2179 = vadd.xlane.f32.xlu0 %v2178_v31  ;;  %v2181_v17 = vsel %vm224_vm3, %v3688_v22, 0.0 }
 0xc25   :  { %2182 = vadd.xlane.f32.xlu1 %v2181_v17 }
 0xc3a   :  { %3614 = vrot.lane.b32.xlu0 %v4029_v40, %s3737_s15 }
 0xcb1   :  { %v2180_v24 = vpop.xlane.xlu0 %2179 }
 0xcb2   :  { %v2183_v27 = vpop.xlane.xlu1 %2182  ;;  %3689 = vrcp.f32 %v2180_v24 }
 0xcb3   :  { %3691 = vrcp.f32 %v2183_v27 }
 0xcb5   :  { %v3615_v26 = vpop.permute.xlu0 %3614 }
 0xcb6   :  { %v3290_v25 = vpop.f32.mrb[12].mxu0  ;;  %v3617_v28 = vunpack.i.h.bf16 %v3615_v26  ;;  %v3616_v13 = vunpack.i.l.bf16 %v3615_v26 }
 0xcb7   :  { %v1704_v8 = vpop.f32.mrb[13].mxu0 }
 0xcb8   :  { %v3473_v36 = vpack.c.bf16 %v3617_v28, %v3616_v13 }
 0xcbb   :  { %v3304_v29 = vpop.f32.mrb[14].mxu0 }
 0xcbc   :  { %v1904_v30 = vpop.f32.mrb[15].mxu0  ;;  %v3690_v39 = vpop.eup %3689 }
 0xcbd   :  { %3307 = vmatprep.mubr.msk.f32.mxu0 %vm140_vm1, %v1904_v30  ;;  %v3692_v44 = vpop.eup %3691  ;;  %v2185_v45 = vmul.f32 %v3690_v39, %v3686_v21  ;;  %v2803_v30 = vld [vmem:[%s4229_s4 + $0x50] sm:$0xff] }
 0xcbe   :  { %3308 = vmatmul.mubr.msk.f32.vlgmr.msra.gmra.mrb[16].mxu0 %vm140_vm1, %v3304_v29  ;;  %v2187_v46 = vmul.f32 %v3692_v44, %v3688_v22  ;;  %v3623_v29 = vpack.i.bf16 %v3979_v9, %v3974_v1  ;;  %v2804_v1 = vld [vmem:[%s4229_s4 + $0x58] sm:$0xff] }
 0xcbf   :  { %3311 = vmatpush3.msra.mxu0 %v1513_v23  ;;  %3312 = vmatprep.mubr.msk.f32.mxu0 %vm140_vm1, %v1704_v8  ;;  %v3499_v9 = vpack.c.bf16 %v2804_v1, %v2803_v30 }
 0xcc0   :  { %v3340_v37 = vpop.f32.mrb[18].mxu1  ;;  %3474 = vmatprep.subr.bf16.mxu0 %v3473_v36 }
 0xcc1   :  { %v2440_v38 = vpop.f32.mrb[19].mxu1  ;;  %v2446_v42 = vadd.f32 %v3340_v37, %v4070_v59  ;;  %v1515_v59 = vld [vmem:[%s4229_s4 + $0x30] sm:$0xff]  ;;  %v2806_v37 = vld [vmem:[%s4229_s4 + $0x68] sm:$0xff] }
 0xcc2   :  { %v2441_v41 = vadd.f32 %v4075_v7, %v2440_v38 }
 0xcc3   :  { %v2452_v47 = vsel %vm224_vm3, %v2446_v42, -inf }
 0xcc4   :  { %v2449_v43 = vsel %vm224_vm3, %v2441_v41, -inf }
 0xcc5   :  { %2450 = vmax.xlane.f32.xlu1 %v2449_v43 }
 0xcc6   :  { %3313 = vmatmul.mubr.msk.f32.vlgmr.msra.gmra.mrb[16].mxu0 %vm140_vm1, %v3290_v25 }
 0xcc7   :  { %3476 = vmatpush3.bf16.msra.mxu0 %v3473_v36  ;;  %3326 = vmatprep.mubr.msk.f32.mxu0 %vm224_vm3, %v2185_v45  ;;  %v3495_v36 = vpack.c.bf16 %v2802_v16, %v2801_v15 }
 0xcc8   :  { %3329 = vmatprep.subr.mxu0 %v1515_v59 }
 0xcc9   :  { %2453 = vmax.xlane.f32.xlu1 %v2452_v47 }
 0xcca   :  { %3327 = vmatmul.mubr.msk.f32.vlgmr.msra.gmra.mrb[18].mxu0 %vm224_vm3, %v2187_v46 }
 0xccb   :  { %3330 = vmatpush3.msra.mxu0 %v1515_v59 }
 0xd52   :  { %v2451_v7 = vpop.xlane.xlu1 %2450 }
 0xd53   :  { %v2455_v49 = vsub.f32 %v2441_v41, %v2451_v7 }
 0xd55   :  { %v2457_v51 = vmul.f32 1.442695, %v2455_v49 }
 0xd56   :  { %v2454_v50 = vpop.xlane.xlu1 %2453 }
 0xd57   :  { %v2456_v48 = vsub.f32 %v2446_v42, %v2454_v50 }
 0xd59   :  { %v2459_v52 = vmul.f32 1.442695, %v2456_v48 }
 0xd5b   :  { %3693 = vpow2.f32 %v2459_v52 }
 0xd5c   :  { %3695 = vpow2.f32 %v2457_v51 }
 0xd65   :  { %v3694_v53 = vpop.eup %3693 }
 0xd66   :  { %v2464_v54 = vsel %vm224_vm3, %v3694_v53, 0.0  ;;  %v3696_v55 = vpop.eup %3695 }
 0xd67   :  { %2465 = vadd.xlane.f32.xlu1 %v2464_v54  ;;  %v2461_v56 = vsel %vm224_vm3, %v3696_v55, 0.0  ;;  %v3036_v54 = vld [vmem:[%s4230_s5 + $0x4] ss:$0 sm:$0xff] }
 0xd6b   :  { %2462 = vadd.xlane.f32.xlu1 %v2461_v56 }
 0xd7c   :  { %3619 = vrot.lane.b32.xlu1 %v4029_v40, %s3739_s21  ;;  %s2944_s21 = sshll.u32 %s3745_s24, 4  ;;  %s2945_s21 = int_to_ptr.vmem [resolvable:$true] %s2944_s21 }
 0xd7d   :  { %s3709_s25 = scalar_lea.vmem %s2945_s21, 256  ;;  %p3714_p1 = scmp.lt.s32.totalorder %s2945_s21, %s2945_s21 }
 0xd7e   :  { %p3710_p0 = scmp.ne.s32.totalorder %s2945_s21, %s3709_s25  ;;  %p3715_p2 = scmp.lt.s32.totalorder %s3709_s25, %s3709_s25 }
 0xd80   :  { %p3716_p3 = por %p3715_p2, %p3714_p1 }
 0xd82   :  { %p3717_p4 = pnand %p3716_p3, %p3710_p0 }
 0xd9d   :  { %v3328_v57 = vpop.f32.mrb[18].mxu0 }
 0xd9e   :  { %v2266_v58 = vpop.f32.mrb[19].mxu0 }
 0xd9f   :  { %3331 = vmatprep.mubr.msk.f32.mxu0 %vm140_vm1, %v2266_v58  ;;  %v3037_v58 = vld [vmem:[%s4230_s5 + $0x7] ss:$0 sm:$0xff] }
 0xda0   :  { %3332 = vmatmul.mubr.msk.f32.vlgmr.msra.gmra.mrb[16].mxu0 %vm140_vm1, %v3328_v57 }
 0xdf4   :  { %v2466_v60 = vpop.xlane.xlu1 %2465 }
 0xdf5   :  { %3697 = vrcp.f32 %v2466_v60 }
 0xdf8   :  { %v2463_v5 = vpop.xlane.xlu1 %2462 }
 0xdf9   :  { %3699 = vrcp.f32 %v2463_v5 }
 0xdfc   :  { %v3620_v61 = vpop.permute.xlu1 %3619 }
 0xdfd   :  { %v3622_v62 = vunpack.i.h.bf16 %v3620_v61  ;;  %v3621_v63 = vunpack.i.l.bf16 %v3620_v61 }
 0xdff   :  { %v3483_v3 = vpack.c.bf16 %v3622_v62, %v3621_v63  ;;  %v3698_v40 = vpop.eup %3697  ;;  %v2807_v62 = vld [vmem:[%s4229_s4 + $0x70] sm:$0xff]  ;;  %v2808_v63 = vld [vmem:[%s4229_s4 + $0x78] sm:$0xff] }
 0xe00   :  { %v2470_v14 = vmul.f32 %v3698_v40, %v3694_v53 }
 0xe01   :  { %3484 = vmatprep.subr.bf16.mxu0 %v3483_v3 }
 0xe02   :  { %3486 = vmatpush3.bf16.msra.mxu0 %v3483_v3  ;;  %v3507_v3 = vpack.c.bf16 %v2808_v63, %v2807_v62 }
 0xe03   :  { %v3700_v0 = vpop.eup %3699  ;;  %3348 = vmatprep.subr.mxu0 %v1516_v6 }
 0xe04   :  { %v2468_v11 = vmul.f32 %v3700_v0, %v3696_v55 }
 0xe06   :  { %3345 = vmatprep.mubr.msk.f32.mxu0 %vm224_vm3, %v2468_v11 }
 0xe07   :  { %3346 = vmatmul.mubr.msk.f32.vlgmr.msra.gmra.mrb[20].mxu0 %vm224_vm3, %v2470_v14 }
 0xe08   :  { %3349 = vmatpush3.msra.mxu0 %v1516_v6 }
 0xe09   :  { %3496 = vmatprep.subr.bf16.mxu0 %v3495_v36 }
 0xeda   :  { %v3347_v10 = vpop.f32.mrb[20].mxu0 }
 0xedb   :  { %v2549_v2 = vpop.f32.mrb[21].mxu0 }
 0xedc   :  { %3350 = vmatprep.mubr.msk.f32.mxu0 %vm140_vm1, %v2549_v2 }
 0xedd   :  { %3351 = vmatmul.mubr.msk.f32.vlgmr.msra.gmra.mrb[16].mxu0 %vm140_vm1, %v3347_v10 }
 0xede   :  { %3498 = vmatpush3.bf16.msra.mxu0 %v3495_v36 }
 0xedf   :  { %3500 = vmatprep.subr.bf16.mxu0 %v3499_v9 }
 0xee2   :  { %3502 = vmatpush3.bf16.msra.mxu0 %v3499_v9  ;;  %v3044_v9 = vld [vmem:[%s4230_s5 + $0x5] ss:$0 sm:$0xff] }
 0xfb0   :  { %v3352_v18 = vpop.f32.mrb[16].mxu0 }
 0xfb1   :  { %v2646_v12 = vadd.f32 %v3352_v18, %v3035_v4  ;;  %v2630_v19 = vpop.f32.mrb[17].mxu0 }
 0xfb2   :  { %v2645_v20 = vadd.f32 %v3035_v4, %v2630_v19  ;;  %v3041_v4 = vld [vmem:[%s4230_s5 + $0x2] ss:$0 sm:$0xff] }
 0xfb3   :  { %v2648_v21 = vadd.f32 %v2646_v12, %v4016_v34 }
 0xfb4   :  { %v2647_v22 = vadd.f32 %v2645_v20, %v4014_v33 }
 0xfb5   :  { %v2654_v31 = vsel %vm48_vm0, %v2648_v21, 0.0 }
 0xfb6   :  { %2655 = vadd.xlane.f32.xlu1 %v2654_v31  ;;  %v2651_v17 = vsel %vm48_vm0, %v2647_v22, 0.0 }
 0xfb7   :  { %2652 = vadd.xlane.f32.xlu0 %v2651_v17 }
 0xfc7   :  { %3629 = vrot.lane.b32.xlu1 %v3628_v32, %s3740_s22 }
0x1043   :  { %v2656_v23 = vpop.xlane.xlu1 %2655 }
0x1044   :  { %v2658_v24 = vmul.f32 0.03125, %v2656_v23  ;;  %v2653_v25 = vpop.xlane.xlu0 %2652 }
0x1045   :  { %v2657_v26 = vmul.f32 0.03125, %v2653_v25 }
0x1046   :  { %v2660_v8 = vsub.f32 %v2648_v21, %v2658_v24 }
0x1047   :  { %v2659_v27 = vsub.f32 %v2647_v22, %v2657_v26  ;;  %v3630_v44 = vpop.permute.xlu1 %3629 }
0x1048   :  { %v2662_v34 = vmul.f32 %v2660_v8, %v2660_v8  ;;  %v3632_v47 = vunpack.i.h.bf16 %v3630_v44  ;;  %v3631_v59 = vunpack.i.l.bf16 %v3630_v44 }
0x1049   :  { %v2661_v28 = vmul.f32 %v2659_v27, %v2659_v27 }
0x104a   :  { %v2666_v33 = vsel %vm48_vm0, %v2662_v34, 0.0  ;;  %v3491_v51 = vpack.c.bf16 %v3632_v47, %v3631_v59 }
0x104b   :  { %2667 = vadd.xlane.f32.xlu0 %v2666_v33  ;;  %v2663_v13 = vsel %vm48_vm0, %v2661_v28, 0.0 }
0x104f   :  { %2664 = vadd.xlane.f32.xlu0 %v2663_v13 }
0x1065   :  { %3624 = vrot.lane.b32.xlu0 %v3623_v29, %s3740_s22 }
0x1069   :  { %2715 = vrot.lane.b32.xlu0 %v4025_v35, %s3740_s22  ;;  %v2805_v35 = vld [vmem:[%s4229_s4 + $0x60] sm:$0xff] }
0x106a   :  { %v3503_v38 = vpack.c.bf16 %v2806_v37, %v2805_v35  ;;  %v3045_v37 = vld [vmem:[%s4230_s5 + $0x8] ss:$0 sm:$0xff] }
0x106c   :  { %3504 = vmatprep.subr.bf16.mxu0 %v3503_v38 }
0x106d   :  { %3506 = vmatpush3.bf16.msra.mxu0 %v3503_v38 }
0x106e   :  { %3508 = vmatprep.subr.bf16.mxu0 %v3507_v3 }
0x1071   :  { %3510 = vmatpush3.bf16.msra.mxu0 %v3507_v3 }
0x10d8   :  { %v2668_v39 = vpop.xlane.xlu0 %2667 }
0x10d9   :  { %v2670_v41 = vmul.f32 0.03125, %v2668_v39 }
0x10db   :  { %v2672_v42 = vadd.f32 1e-05, %v2670_v41 }
0x10dc   :  { %v2665_v43 = vpop.xlane.xlu0 %2664 }
0x10dd   :  { %3701 = vrsqrt.f32 %v2672_v42  ;;  %v2669_v45 = vmul.f32 0.03125, %v2665_v43 }
0x10df   :  { %v2671_v46 = vadd.f32 1e-05, %v2669_v45 }
0x10e0   :  { %v3625_v7 = vpop.permute.xlu0 %3624 }
0x10e1   :  { %3703 = vrsqrt.f32 %v2671_v46  ;;  %v3627_v49 = vunpack.i.h.bf16 %v3625_v7  ;;  %v3626_v50 = vunpack.i.l.bf16 %v3625_v7 }
0x10e3   :  { %v3487_v48 = vpack.c.bf16 %v3627_v49, %v3626_v50 }
0x10e4   :  { %v2716_v6 = vpop.permute.xlu0 %2715 }
0x10e5   :  { %3488 = vmatprep.subr.bf16.mxu1 %v3487_v48 }
0x10e6   :  { %3490 = vmatpush3.bf16.msra.mxu1 %v3487_v48 }
0x10e7   :  { %v3702_v52 = vpop.eup %3701  ;;  %3492 = vmatprep.subr.bf16.mxu1 %v3491_v51 }
0x10e8   :  { %v2676_v53 = vmul.f32 %v3702_v52, %v2660_v8 }
0x10ea   :  { %3494 = vmatpush3.bf16.msra.mxu1 %v3491_v51  ;;  %v2682_v57 = vmul.f32 %v3036_v54, %v2676_v53 }
0x10eb   :  { %v3704_v55 = vpop.eup %3703 }
0x10ec   :  { %v2675_v56 = vmul.f32 %v3704_v55, %v2659_v27  ;;  %v2688_v61 = vadd.f32 %v3037_v58, %v2682_v57 }
0x10ee   :  { %v2681_v60 = vmul.f32 %v3036_v54, %v2675_v56 }
0x10f0   :  { %v2687_v5 = vadd.f32 %v3037_v58, %v2681_v60 }
0x10f2   :  { %3361 = vmatprep.mubr.msk.f32.mxu1 %vm48_vm0, %v2687_v5 }
0x10f3   :  { %3362 = vmatmul.mubr.msk.f32.vlgmr.msra.gmra.mrb[20].mxu1 %vm48_vm0, %v2688_v61 }
0x11c6   :  { %v3363_v40 = vpop.f32.mrb[20].mxu1 }
0x11c7   :  { %v2796_v0 = vadd.f32 %v3363_v40, %v2716_v6  ;;  %v2790_v11 = vpop.f32.mrb[21].mxu1 }
0x11c8   :  { %v2791_v14 = vadd.f32 %v2790_v11, %v2716_v6 }
0x11c9   :  { %v2800_v2 = vmax.f32 %v2796_v0, 0.0 }
0x11ca   :  { %v2799_v10 = vmax.f32 %v2791_v14, 0.0 }
0x11cc   :  { %3380 = vmatprep.mubr.msk.f32.mxu0 %vm2813_vm4, %v2799_v10 }
0x11cd   :  { %3381 = vmatmul.mubr.msk.f32.vlgmr.msra.gmra.mrb[22].mxu0 %vm2813_vm4, %v2800_v2 }
0x12a0   :  { %v3382_v18 = vpop.f32.mrb[22].mxu0 }
0x12a1   :  { %v2892_v12 = vadd.f32 %v3382_v18, %v3041_v4  ;;  %v2886_v19 = vpop.f32.mrb[23].mxu0 }
0x12a2   :  { %v2887_v20 = vadd.f32 %v3041_v4, %v2886_v19 }
0x12a3   :  { %v2896_v21 = vadd.f32 %v2892_v12, %v2688_v61 }
0x12a4   :  { %v2895_v22 = vadd.f32 %v2887_v20, %v2687_v5 }
0x12a5   :  { %v2902_v31 = vsel %vm48_vm0, %v2896_v21, 0.0 }
0x12a6   :  { %2903 = vadd.xlane.f32.xlu1 %v2902_v31  ;;  %v2899_v17 = vsel %vm48_vm0, %v2895_v22, 0.0 }
0x12a7   :  { %2900 = vadd.xlane.f32.xlu0 %v2899_v17 }
0x1333   :  { %v2904_v32 = vpop.xlane.xlu1 %2903 }
0x1334   :  { %v2906_v23 = vmul.f32 0.03125, %v2904_v32  ;;  %v2901_v24 = vpop.xlane.xlu0 %2900 }
0x1335   :  { %v2905_v25 = vmul.f32 0.03125, %v2901_v24 }
0x1336   :  { %v2908_v26 = vsub.f32 %v2896_v21, %v2906_v23 }
0x1337   :  { %v2907_v8 = vsub.f32 %v2895_v22, %v2905_v25 }
0x1338   :  { %v2910_v33 = vmul.f32 %v2908_v26, %v2908_v26 }
0x1339   :  { %v2909_v27 = vmul.f32 %v2907_v8, %v2907_v8 }
0x133a   :  { %v2914_v28 = vsel %vm48_vm0, %v2910_v33, 0.0 }
0x133b   :  { %v2911_v34 = vsel %vm48_vm0, %v2909_v27, 0.0 }
0x133c   :  { %2912 = vadd.xlane.f32.xlu0 %v2911_v34 }
0x1340   :  { %2915 = vadd.xlane.f32.xlu0 %v2914_v28 }
0x13c9   :  { %v2913_v13 = vpop.xlane.xlu0 %2912 }
0x13ca   :  { %v2917_v29 = vmul.f32 0.03125, %v2913_v13 }
0x13cc   :  { %v2919_v15 = vadd.f32 1e-05, %v2917_v29 }
0x13cd   :  { %v2916_v16 = vpop.xlane.xlu0 %2915 }
0x13ce   :  { %3705 = vrsqrt.f32 %v2919_v15  ;;  %v2918_v30 = vmul.f32 0.03125, %v2916_v16 }
0x13d0   :  { %v2920_v36 = vadd.f32 1e-05, %v2918_v30 }
0x13d2   :  { %3707 = vrsqrt.f32 %v2920_v36 }
0x13d8   :  { %v3706_v1 = vpop.eup %3705 }
0x13d9   :  { %v2923_v35 = vmul.f32 %v3706_v1, %v2907_v8 }
0x13db   :  { %v2929_v38 = vmul.f32 %v3044_v9, %v2923_v35 }
0x13dc   :  { %v3708_v39 = vpop.eup %3707 }
0x13dd   :  { %v2924_v41 = vmul.f32 %v3708_v39, %v2908_v26  ;;  %v2935_v42 = vadd.f32 %v3045_v37, %v2929_v38 }
0x13df   :  { %v2930_v43 = vmul.f32 %v3044_v9, %v2924_v41  ;;  %2937 = vst.msk [vmem:[#allocation2] sm:$0xff] %vm48_vm0, %v2935_v42 }
0x13e1   :  { %v2936_v44 = vadd.f32 %v3045_v37, %v2930_v43 }
0x13e3   :  { %2938 = vst.msk [vmem:[#allocation2 + $0x8] sm:$0xff] %vm48_vm0, %v2936_v44 }
0x13e4   :  { %3720 = shalt.err (!%p3717_p4)
}
0x13e5   :  { %s3721_s27 = scalar_lea.hbm %s4231_s6, 256 }
0x13e6   :  { %p3722_p5 = scmp.ne.s32.totalorder %s4231_s6, %s3721_s27  ;;  %p3725_p6 = scmp.lt.u32.totalorder %s3721_s27, %s4231_s6 }
0x13e8   :  { %p3727_p7 = pnand %p3725_p6, %p3722_p5 }
0x13ea   :  { %3730 = shalt.err (!%p3727_p7)
}
0x13eb   :  { %s3746_s8 = smov 128   ;;  %s3747_s0 = smov 8  }
0x13ec   :  { %2950 = dma.vmem_to_hbm [thread:$0]  %s2945_s21, 256, %s4231_s6, [#allocation3], %s3746_s8, %s3746_s8, %s3747_s0  }
0x13ed   :  { %3731 = dma.done.wait [#allocation3], 256  }
0x13ee   :  { %3732 = vsyncadd [#allocation3], 4294967040 }
0x13ef   :  { %2954 = vsyncpa [#allocation3], 1 }

</bundles_post_ra>
